<compile_context>
chip_gen: v7x
topology: tpu7x:2x2x1
jax: 0.10.0
libtpu: 0.0.40
codegen_flags: <defaults>
</compile_context>

<pallas_src>
import functools
import math

import jax
import jax.numpy as jnp
from jax.experimental import pallas as pl
from jax.experimental.pallas import tpu as pltpu

NPAD = 128   # classifier output padded to a full 128-lane vector
ROWS = 8     # sublane padding for the logits output block


# ------------------------------ Model config -------------------------------

class Config:
    vocab_size = 128
    hidden = 32
    heads = 4
    layers = 2
    intermediate = 128
    max_pos = 16
    type_vocab = 2
    n_classes = 3
    seq = 8
    batch = 2


# ----------------------------- Pallas kernel -------------------------------

def _layernorm(x, g, b, eps):
    mu = jnp.mean(x, axis=-1, keepdims=True)
    var = jnp.mean(jnp.square(x - mu), axis=-1, keepdims=True)
    return (x - mu) * jax.lax.rsqrt(var + eps) * g + b


def _bert_fused_kernel(
    emb_ref, mask_ref, eg_ref, eb_ref,
    wqkv_ref, bqkv_ref, wo_ref, bo_ref, ln1g_ref, ln1b_ref,
    wi_ref, bi_ref, wf_ref, bf_ref, ln2g_ref, ln2b_ref,
    pw_ref, pb_ref, cw_ref, cb_ref,
    logits_ref,
    x_scr,
    *, B, S, H, Dh, eps):
    D = H * Dh
    l = pl.program_id(0)

    # First grid step: embedding LayerNorm (no residual), all batch rows.
    @pl.when(l == 0)
    def _():
        x0 = emb_ref[...].astype(jnp.float32)                        # (B*S, D)
        x_scr[...] = _layernorm(x0, eg_ref[...], eb_ref[...], eps)

    x = x_scr[...]                                                   # (B*S, D) f32
    xb = x.astype(jnp.bfloat16)

    # Fused QKV projection for every batch row at once (1/sqrt(Dh) is already
    # folded into the Q columns of wqkv at init).
    qkv = jnp.dot(xb, wqkv_ref[0],
                  preferred_element_type=jnp.float32) + bqkv_ref[0]  # (B*S, 3D)

    # Multi-head self-attention.  Per-head contexts are assembled into one
    # (B*S, D) buffer so the output projection is a single K=D MXU matmul.
    # TODO(synk): at bert-base Dh=64, process head pairs so each Q/K/V lane
    # slice is exactly 128 lanes wide; at this toy config qkv fits one vreg.
    ctx_rows = []
    for b in range(B):
        qkv_b = qkv[b * S:(b + 1) * S, :]
        bias_b = mask_ref[b:b + 1, :S]                               # (1, S)
        ctx_heads = []
        for h in range(H):
            q_h = qkv_b[:, h * Dh:(h + 1) * Dh].astype(jnp.bfloat16)
            k_h = qkv_b[:, D + h * Dh:D + (h + 1) * Dh].astype(jnp.bfloat16)
            v_h = qkv_b[:, 2 * D + h * Dh:2 * D + (h + 1) * Dh].astype(jnp.bfloat16)
            s = jax.lax.dot_general(q_h, k_h, (((1,), (1,)), ((), ())),
                                    preferred_element_type=jnp.float32)
            s = s + bias_b
            s = s - jnp.max(s, axis=-1, keepdims=True)
            p = jnp.exp(s)
            p = p * pl.reciprocal(jnp.sum(p, axis=-1, keepdims=True), approx=True)
            ctx_heads.append(jnp.dot(p.astype(jnp.bfloat16), v_h,
                                     preferred_element_type=jnp.float32))
        ctx_rows.append(jnp.concatenate(ctx_heads, axis=-1))         # (S, D)
    ctx = jnp.concatenate(ctx_rows, axis=0)                          # (B*S, D)

    attn = jnp.dot(ctx.astype(jnp.bfloat16), wo_ref[0],
                   preferred_element_type=jnp.float32) + bo_ref[0]

    x1 = _layernorm(attn + x, ln1g_ref[0], ln1b_ref[0], eps)

    # Feed-forward with tanh-approximate GELU (EUP tanh instead of a long VPU
    # erf polynomial; tiny numeric deviation from BERT's exact-erf GELU).
    inter = jnp.dot(x1.astype(jnp.bfloat16), wi_ref[0],
                    preferred_element_type=jnp.float32) + bi_ref[0]
    c = math.sqrt(2.0 / math.pi)
    inter = 0.5 * inter * (
        1.0 + jnp.tanh(c * (inter + 0.044715 * inter * inter * inter)))
    ffn = jnp.dot(inter.astype(jnp.bfloat16), wf_ref[0],
                  preferred_element_type=jnp.float32) + bf_ref[0]
    x2 = _layernorm(ffn + x1, ln2g_ref[0], ln2b_ref[0], eps)

    x_scr[...] = x2

    # After the last layer: BERT pooler (CLS dense + tanh), Dropout (identity
    # in eval), classifier -- all on the VMEM-resident CLS rows of every batch.
    @pl.when(l == pl.num_programs(0) - 1)
    def _():
        cls = jnp.concatenate([x2[b * S:b * S + 1, :] for b in range(B)],
                              axis=0)                                # (B, D)
        pooled = jnp.tanh(
            jnp.dot(cls.astype(jnp.bfloat16), pw_ref[...],
                    preferred_element_type=jnp.float32) + pb_ref[...])
        logit = jnp.dot(pooled.astype(jnp.bfloat16), cw_ref[...],
                        preferred_element_type=jnp.float32) + cb_ref[...]  # (B, NPAD)
        pad = jnp.zeros((logits_ref.shape[0] - B, NPAD), jnp.float32)
        logits_ref[...] = jnp.concatenate([logit, pad], axis=0)      # (ROWS, NPAD)


def bert_forward_pallas(params, emb, mask_bias, cfg):
    B, S = cfg.batch, cfg.seq
    D, L, F, H = cfg.hidden, cfg.layers, cfg.intermediate, cfg.heads
    Dh = D // H

    kernel = functools.partial(_bert_fused_kernel, B=B, S=S, H=H, Dh=Dh,
                               eps=1e-12)
    const2 = lambda l: (0, 0)
    layer3 = lambda l: (l, 0, 0)

    return pl.pallas_call(
        kernel,
        out_shape=jax.ShapeDtypeStruct((ROWS, NPAD), jnp.float32),
        grid=(L,),
        in_specs=[
            pl.BlockSpec((B * S, D), const2),          # embedded input (bf16)
            pl.BlockSpec((B, NPAD), const2),           # additive key-mask bias
            pl.BlockSpec((1, D), const2),              # embedding LN gamma
            pl.BlockSpec((1, D), const2),              # embedding LN beta
            pl.BlockSpec((1, D, 3 * D), layer3),       # fused W_qkv (bf16)
            pl.BlockSpec((1, 1, 3 * D), layer3),       # fused b_qkv
            pl.BlockSpec((1, D, D), layer3),           # W_o (bf16)
            pl.BlockSpec((1, 1, D), layer3),           # b_o
            pl.BlockSpec((1, 1, D), layer3),           # LN1 gamma
            pl.BlockSpec((1, 1, D), layer3),           # LN1 beta
            pl.BlockSpec((1, D, F), layer3),           # W_in (bf16)
            pl.BlockSpec((1, 1, F), layer3),           # b_in
            pl.BlockSpec((1, F, D), layer3),           # W_out (bf16)
            pl.BlockSpec((1, 1, D), layer3),           # b_out
            pl.BlockSpec((1, 1, D), layer3),           # LN2 gamma
            pl.BlockSpec((1, 1, D), layer3),           # LN2 beta
            pl.BlockSpec((D, D), const2),              # pooler W (bf16)
            pl.BlockSpec((1, D), const2),              # pooler b
            pl.BlockSpec((D, NPAD), const2),           # classifier W (bf16, padded)
            pl.BlockSpec((1, NPAD), const2),           # classifier b (padded)
        ],
        out_specs=pl.BlockSpec((ROWS, NPAD), const2),
        scratch_shapes=[pltpu.VMEM((B * S, D), jnp.float32)],
        compiler_params=pltpu.CompilerParams(
            dimension_semantics=("arbitrary",)),
    )(emb, mask_bias,
      params["emb_ln_g"], params["emb_ln_b"],
      params["wqkv"], params["bqkv"], params["wo"], params["bo"],
      params["ln1_g"], params["ln1_b"],
      params["wi"], params["bi"], params["wf"], params["bf"],
      params["ln2_g"], params["ln2_b"],
      params["pool_w"], params["pool_b"], params["cls_w"], params["cls_b"])


# ------------------------------ Parameters ---------------------------------

def init_params(key, cfg):
    keys = iter(jax.random.split(key, 32))
    D, F, L, H = cfg.hidden, cfg.intermediate, cfg.layers, cfg.heads
    Dh = D // H

    def w(shape):
        return 0.02 * jax.random.normal(next(keys), shape, jnp.float32)

    # Fold the 1/sqrt(Dh) attention scale into the Q columns of the fused QKV
    # weight (exact; the Q bias is zero here, otherwise scale it too).
    wqkv = w((L, D, 3 * D))
    wqkv = wqkv.at[:, :, :D].multiply(1.0 / math.sqrt(Dh))

    cls_w = jnp.zeros((D, NPAD), jnp.float32)
    cls_w = cls_w.at[:, :cfg.n_classes].set(w((D, cfg.n_classes)))

    return {
        "word_emb": w((cfg.vocab_size, D)),
        "pos_emb": w((cfg.max_pos, D)),
        "type_emb": w((cfg.type_vocab, D)),
        "emb_ln_g": jnp.ones((1, D), jnp.float32),
        "emb_ln_b": jnp.zeros((1, D), jnp.float32),
        # Per-layer weights stacked on a leading layer axis; MXU operands bf16.
        "wqkv": wqkv.astype(jnp.bfloat16),
        "bqkv": jnp.zeros((L, 1, 3 * D), jnp.float32),
        "wo": w((L, D, D)).astype(jnp.bfloat16),
        "bo": jnp.zeros((L, 1, D), jnp.float32),
        "ln1_g": jnp.ones((L, 1, D), jnp.float32),
        "ln1_b": jnp.zeros((L, 1, D), jnp.float32),
        "wi": w((L, D, F)).astype(jnp.bfloat16),
        "bi": jnp.zeros((L, 1, F), jnp.float32),
        "wf": w((L, F, D)).astype(jnp.bfloat16),
        "bf": jnp.zeros((L, 1, D), jnp.float32),
        "ln2_g": jnp.ones((L, 1, D), jnp.float32),
        "ln2_b": jnp.zeros((L, 1, D), jnp.float32),
        "pool_w": w((D, D)).astype(jnp.bfloat16),
        "pool_b": jnp.zeros((1, D), jnp.float32),
        "cls_w": cls_w.astype(jnp.bfloat16),
        "cls_b": jnp.zeros((1, NPAD), jnp.float32),
    }


# ------------------------------ Forward pass -------------------------------

@functools.partial(jax.jit, static_argnums=(3,))
def bert_sentiment_forward(params, input_ids, attention_mask, cfg):
    B, S = input_ids.shape
    # Embedding gathers are plain-JAX glue; everything downstream is in Pallas.
    emb = (params["word_emb"][input_ids]
           + params["pos_emb"][jnp.arange(S)][None, :, :]
           + params["type_emb"][0][None, None, :])
    # Batch folded into rows; activations stream to the kernel in bf16.
    emb = emb.reshape(B * S, cfg.hidden).astype(jnp.bfloat16)
    # Additive key-mask bias, computed once, padded to 128 lanes (lane-dense).
    mask_bias = jnp.zeros((B, NPAD), jnp.float32)
    mask_bias = mask_bias.at[:, :S].set(
        (1.0 - attention_mask.astype(jnp.float32)) * (-1e9))
    out = bert_forward_pallas(params, emb, mask_bias, cfg)   # (ROWS, NPAD)
    return out[:B, :cfg.n_classes]


# ---------------------------------- Main -----------------------------------

if __name__ == "__main__":
    cfg = Config()
    root = jax.random.PRNGKey(0)
    k_params, k_ids = jax.random.split(root)

    params = init_params(k_params, cfg)

    input_ids = jax.random.randint(
        k_ids, (cfg.batch, cfg.seq), 0, cfg.vocab_size, dtype=jnp.int32)
    # First batch row fully valid, second row padded in the last 3 positions.
    attention_mask = jnp.array(
        [[1] * cfg.seq,
         [1] * (cfg.seq - 3) + [0] * 3], dtype=jnp.int32)

    logits = bert_sentiment_forward(params, input_ids, attention_mask, cfg)
    jax.block_until_ready(logits)
    assert logits.shape == (cfg.batch, cfg.n_classes)
    assert bool(jnp.all(jnp.isfinite(logits)))
    print("KERNEL_OK")
</pallas_src>

<mosaic_0001>
module attributes {stable_mosaic.version = 11 : i64} {
  func.func @_bert_fused_kernel(%arg0: i32, %arg1: memref<16x32xbf16, #tpu.memory_space<vmem>>, %arg2: memref<2x128xf32, #tpu.memory_space<vmem>>, %arg3: memref<1x32xf32, #tpu.memory_space<vmem>>, %arg4: memref<1x32xf32, #tpu.memory_space<vmem>>, %arg5: memref<1x32x96xbf16, #tpu.memory_space<vmem>>, %arg6: memref<1x1x96xf32, #tpu.memory_space<vmem>>, %arg7: memref<1x32x32xbf16, #tpu.memory_space<vmem>>, %arg8: memref<1x1x32xf32, #tpu.memory_space<vmem>>, %arg9: memref<1x1x32xf32, #tpu.memory_space<vmem>>, %arg10: memref<1x1x32xf32, #tpu.memory_space<vmem>>, %arg11: memref<1x32x128xbf16, #tpu.memory_space<vmem>>, %arg12: memref<1x1x128xf32, #tpu.memory_space<vmem>>, %arg13: memref<1x128x32xbf16, #tpu.memory_space<vmem>>, %arg14: memref<1x1x32xf32, #tpu.memory_space<vmem>>, %arg15: memref<1x1x32xf32, #tpu.memory_space<vmem>>, %arg16: memref<1x1x32xf32, #tpu.memory_space<vmem>>, %arg17: memref<32x32xbf16, #tpu.memory_space<vmem>>, %arg18: memref<1x32xf32, #tpu.memory_space<vmem>>, %arg19: memref<32x128xbf16, #tpu.memory_space<vmem>>, %arg20: memref<1x128xf32, #tpu.memory_space<vmem>>, %arg21: memref<8x128xf32, #tpu.memory_space<vmem>>, %arg22: memref<16x32xf32, #tpu.memory_space<vmem>>) attributes {dimension_semantics = [#tpu.dimension_semantics<arbitrary>], iteration_bounds = array<i64: 2>, scalar_prefetch = 0 : i64, scratch_operands = 1 : i64, tpu.core_type = #tpu.core_type<tc>, window_params = [{pipeline_mode = #tpu.pipeline_mode<synchronous>, transform_indices = @transform_0, window_bounds = array<i64: 16, 32>}, {pipeline_mode = #tpu.pipeline_mode<synchronous>, transform_indices = @transform_1, window_bounds = array<i64: 2, 128>}, {pipeline_mode = #tpu.pipeline_mode<synchronous>, transform_indices = @transform_2, window_bounds = array<i64: 1, 32>}, {pipeline_mode = #tpu.pipeline_mode<synchronous>, transform_indices = @transform_3, window_bounds = array<i64: 1, 32>}, {transform_indices = @transform_4, window_bounds = array<i64: 1, 32, 96>}, {transform_indices = @transform_5, window_bounds = array<i64: 1, 1, 96>}, {transform_indices = @transform_6, window_bounds = array<i64: 1, 32, 32>}, {transform_indices = @transform_7, window_bounds = array<i64: 1, 1, 32>}, {transform_indices = @transform_8, window_bounds = array<i64: 1, 1, 32>}, {transform_indices = @transform_9, window_bounds = array<i64: 1, 1, 32>}, {transform_indices = @transform_10, window_bounds = array<i64: 1, 32, 128>}, {transform_indices = @transform_11, window_bounds = array<i64: 1, 1, 128>}, {transform_indices = @transform_12, window_bounds = array<i64: 1, 128, 32>}, {transform_indices = @transform_13, window_bounds = array<i64: 1, 1, 32>}, {transform_indices = @transform_14, window_bounds = array<i64: 1, 1, 32>}, {transform_indices = @transform_15, window_bounds = array<i64: 1, 1, 32>}, {pipeline_mode = #tpu.pipeline_mode<synchronous>, transform_indices = @transform_16, window_bounds = array<i64: 32, 32>}, {pipeline_mode = #tpu.pipeline_mode<synchronous>, transform_indices = @transform_17, window_bounds = array<i64: 1, 32>}, {pipeline_mode = #tpu.pipeline_mode<synchronous>, transform_indices = @transform_18, window_bounds = array<i64: 32, 128>}, {pipeline_mode = #tpu.pipeline_mode<synchronous>, transform_indices = @transform_19, window_bounds = array<i64: 1, 128>}, {pipeline_mode = #tpu.pipeline_mode<synchronous>, transform_indices = @transform_20, window_bounds = array<i64: 8, 128>}]} {
    %c0_i32 = arith.constant 0 : i32
    %0 = arith.cmpi eq, %arg0, %c0_i32 : i32
    %1 = arith.extui %0 : i1 to i32
    %c0_i32_0 = arith.constant 0 : i32
    %2 = arith.cmpi ne, %1, %c0_i32_0 : i32
    scf.if %2 {
      %c0_93 = arith.constant 0 : index
      %c0_94 = arith.constant 0 : index
      %282 = vector.load %arg1[%c0_93, %c0_94] : memref<16x32xbf16, #tpu.memory_space<vmem>>, vector<16x32xbf16>
      %283 = arith.extf %282 : vector<16x32xbf16> to vector<16x32xf32>
      %c0_95 = arith.constant 0 : index
      %c0_96 = arith.constant 0 : index
      %284 = vector.load %arg3[%c0_95, %c0_96] : memref<1x32xf32, #tpu.memory_space<vmem>>, vector<1x32xf32>
      %c0_97 = arith.constant 0 : index
      %c0_98 = arith.constant 0 : index
      %285 = vector.load %arg4[%c0_97, %c0_98] : memref<1x32xf32, #tpu.memory_space<vmem>>, vector<1x32xf32>
      %cst_99 = arith.constant dense<0.000000e+00> : vector<16xf32>
      %286 = vector.multi_reduction <add>, %283, %cst_99 [1] : vector<16x32xf32> to vector<16xf32>
      %287 = vector.shape_cast %286 : vector<16xf32> to vector<16x1xf32>
      %cst_100 = arith.constant 3.200000e+01 : f32
      %288 = vector.broadcast %cst_100 : f32 to vector<16x1xf32>
      %289 = arith.divf %287, %288 : vector<16x1xf32>
      %290 = vector.broadcast %289 : vector<16x1xf32> to vector<16x32xf32>
      %291 = arith.subf %283, %290 : vector<16x32xf32>
      %292 = arith.mulf %291, %291 : vector<16x32xf32>
      %cst_101 = arith.constant dense<0.000000e+00> : vector<16xf32>
      %293 = vector.multi_reduction <add>, %292, %cst_101 [1] : vector<16x32xf32> to vector<16xf32>
      %294 = vector.shape_cast %293 : vector<16xf32> to vector<16x1xf32>
      %cst_102 = arith.constant 3.200000e+01 : f32
      %295 = vector.broadcast %cst_102 : f32 to vector<16x1xf32>
      %296 = arith.divf %294, %295 : vector<16x1xf32>
      %297 = vector.broadcast %289 : vector<16x1xf32> to vector<16x32xf32>
      %298 = arith.subf %283, %297 : vector<16x32xf32>
      %cst_103 = arith.constant 9.99999996E-13 : f32
      %299 = vector.broadcast %cst_103 : f32 to vector<16x1xf32>
      %300 = arith.addf %296, %299 : vector<16x1xf32>
      %301 = math.rsqrt %300 : vector<16x1xf32>
      %302 = vector.broadcast %301 : vector<16x1xf32> to vector<16x32xf32>
      %303 = arith.mulf %298, %302 : vector<16x32xf32>
      %304 = vector.broadcast %284 : vector<1x32xf32> to vector<16x32xf32>
      %305 = arith.mulf %303, %304 : vector<16x32xf32>
      %306 = vector.broadcast %285 : vector<1x32xf32> to vector<16x32xf32>
      %307 = arith.addf %305, %306 : vector<16x32xf32>
      %c0_104 = arith.constant 0 : index
      %c0_105 = arith.constant 0 : index
      %308 = vector.load %arg22[%c0_104, %c0_105] : memref<16x32xf32, #tpu.memory_space<vmem>>, vector<16x32xf32>
      tpu.vector_store %arg22[%c0_104, %c0_105], %307 {strides = array<i32>} : memref<16x32xf32, #tpu.memory_space<vmem>>, vector<16x32xf32>,
    } else {
    }
    %c0 = arith.constant 0 : index
    %c0_1 = arith.constant 0 : index
    %3 = vector.load %arg22[%c0, %c0_1] : memref<16x32xf32, #tpu.memory_space<vmem>>, vector<16x32xf32>
    %4 = arith.truncf %3 : vector<16x32xf32> to vector<16x32xbf16>
    %c0_2 = arith.constant 0 : index
    %c0_3 = arith.constant 0 : index
    %c0_4 = arith.constant 0 : index
    %5 = vector.load %arg5[%c0_2, %c0_3, %c0_4] : memref<1x32x96xbf16, #tpu.memory_space<vmem>>, vector<1x32x96xbf16>
    %6 = vector.shape_cast %5 : vector<1x32x96xbf16> to vector<32x96xbf16>
    %cst = arith.constant dense<0.000000e+00> : vector<16x96xf32>
    %7 = tpu.matmul %4, %6, %cst {dimension_numbers = #tpu.dot_dimension_numbers<[1], [0], [0], [1], [0, 0, 1, 1], [], []>} : vector<16x32xbf16>, vector<32x96xbf16>, vector<16x96xf32> -> vector<16x96xf32>
    %c0_5 = arith.constant 0 : index
    %c0_6 = arith.constant 0 : index
    %c0_7 = arith.constant 0 : index
    %8 = vector.load %arg6[%c0_5, %c0_6, %c0_7] : memref<1x1x96xf32, #tpu.memory_space<vmem>>, vector<1x1x96xf32>
    %9 = vector.shape_cast %8 : vector<1x1x96xf32> to vector<1x96xf32>
    %10 = vector.broadcast %9 : vector<1x96xf32> to vector<16x96xf32>
    %11 = arith.addf %7, %10 : vector<16x96xf32>
    %12 = vector.extract_strided_slice %11 {offsets = [0, 0], sizes = [8, 96], strides = [1, 1]} : vector<16x96xf32> to vector<8x96xf32>
    %c0_8 = arith.constant 0 : index
    %c0_9 = arith.constant 0 : index
    %13 = vector.load %arg2[%c0_8, %c0_9] : memref<2x128xf32, #tpu.memory_space<vmem>>, vector<1x8xf32>
    %14 = vector.extract_strided_slice %12 {offsets = [0, 0], sizes = [8, 8], strides = [1, 1]} : vector<8x96xf32> to vector<8x8xf32>
    %15 = arith.truncf %14 : vector<8x8xf32> to vector<8x8xbf16>
    %16 = vector.extract_strided_slice %12 {offsets = [0, 32], sizes = [8, 8], strides = [1, 1]} : vector<8x96xf32> to vector<8x8xf32>
    %17 = arith.truncf %16 : vector<8x8xf32> to vector<8x8xbf16>
    %18 = vector.extract_strided_slice %12 {offsets = [0, 64], sizes = [8, 8], strides = [1, 1]} : vector<8x96xf32> to vector<8x8xf32>
    %19 = arith.truncf %18 : vector<8x8xf32> to vector<8x8xbf16>
    %cst_10 = arith.constant dense<0.000000e+00> : vector<8x8xf32>
    %20 = tpu.matmul %15, %17, %cst_10 {dimension_numbers = #tpu.dot_dimension_numbers<[1], [1], [0], [0], [0, 0, 1, 0], [], []>} : vector<8x8xbf16>, vector<8x8xbf16>, vector<8x8xf32> -> vector<8x8xf32>
    %21 = vector.broadcast %13 : vector<1x8xf32> to vector<8x8xf32>
    %22 = arith.addf %20, %21 : vector<8x8xf32>
    %cst_11 = arith.constant dense<0xFF800000> : vector<8xf32>
    %23 = vector.multi_reduction <maximumf>, %22, %cst_11 [1] : vector<8x8xf32> to vector<8xf32>
    %24 = vector.shape_cast %23 : vector<8xf32> to vector<8x1xf32>
    %25 = vector.broadcast %24 : vector<8x1xf32> to vector<8x8xf32>
    %26 = arith.subf %22, %25 : vector<8x8xf32>
    %27 = math.exp %26 : vector<8x8xf32>
    %cst_12 = arith.constant dense<0.000000e+00> : vector<8xf32>
    %28 = vector.multi_reduction <add>, %27, %cst_12 [1] : vector<8x8xf32> to vector<8xf32>
    %29 = vector.shape_cast %28 : vector<8xf32> to vector<8x1xf32>
    %30 = tpu.reciprocal %29 {approx = true} : vector<8x1xf32> -> vector<8x1xf32>
    %31 = vector.broadcast %30 : vector<8x1xf32> to vector<8x8xf32>
    %32 = arith.mulf %27, %31 : vector<8x8xf32>
    %33 = arith.truncf %32 : vector<8x8xf32> to vector<8x8xbf16>
    %cst_13 = arith.constant dense<0.000000e+00> : vector<8x8xf32>
    %34 = tpu.matmul %33, %19, %cst_13 {dimension_numbers = #tpu.dot_dimension_numbers<[1], [0], [0], [1], [0, 0, 1, 1], [], []>} : vector<8x8xbf16>, vector<8x8xbf16>, vector<8x8xf32> -> vector<8x8xf32>
    %35 = vector.extract_strided_slice %12 {offsets = [0, 8], sizes = [8, 8], strides = [1, 1]} : vector<8x96xf32> to vector<8x8xf32>
    %36 = arith.truncf %35 : vector<8x8xf32> to vector<8x8xbf16>
    %37 = vector.extract_strided_slice %12 {offsets = [0, 40], sizes = [8, 8], strides = [1, 1]} : vector<8x96xf32> to vector<8x8xf32>
    %38 = arith.truncf %37 : vector<8x8xf32> to vector<8x8xbf16>
    %39 = vector.extract_strided_slice %12 {offsets = [0, 72], sizes = [8, 8], strides = [1, 1]} : vector<8x96xf32> to vector<8x8xf32>
    %40 = arith.truncf %39 : vector<8x8xf32> to vector<8x8xbf16>
    %cst_14 = arith.constant dense<0.000000e+00> : vector<8x8xf32>
    %41 = tpu.matmul %36, %38, %cst_14 {dimension_numbers = #tpu.dot_dimension_numbers<[1], [1], [0], [0], [0, 0, 1, 0], [], []>} : vector<8x8xbf16>, vector<8x8xbf16>, vector<8x8xf32> -> vector<8x8xf32>
    %42 = vector.broadcast %13 : vector<1x8xf32> to vector<8x8xf32>
    %43 = arith.addf %41, %42 : vector<8x8xf32>
    %cst_15 = arith.constant dense<0xFF800000> : vector<8xf32>
    %44 = vector.multi_reduction <maximumf>, %43, %cst_15 [1] : vector<8x8xf32> to vector<8xf32>
    %45 = vector.shape_cast %44 : vector<8xf32> to vector<8x1xf32>
    %46 = vector.broadcast %45 : vector<8x1xf32> to vector<8x8xf32>
    %47 = arith.subf %43, %46 : vector<8x8xf32>
    %48 = math.exp %47 : vector<8x8xf32>
    %cst_16 = arith.constant dense<0.000000e+00> : vector<8xf32>
    %49 = vector.multi_reduction <add>, %48, %cst_16 [1] : vector<8x8xf32> to vector<8xf32>
    %50 = vector.shape_cast %49 : vector<8xf32> to vector<8x1xf32>
    %51 = tpu.reciprocal %50 {approx = true} : vector<8x1xf32> -> vector<8x1xf32>
    %52 = vector.broadcast %51 : vector<8x1xf32> to vector<8x8xf32>
    %53 = arith.mulf %48, %52 : vector<8x8xf32>
    %54 = arith.truncf %53 : vector<8x8xf32> to vector<8x8xbf16>
    %cst_17 = arith.constant dense<0.000000e+00> : vector<8x8xf32>
    %55 = tpu.matmul %54, %40, %cst_17 {dimension_numbers = #tpu.dot_dimension_numbers<[1], [0], [0], [1], [0, 0, 1, 1], [], []>} : vector<8x8xbf16>, vector<8x8xbf16>, vector<8x8xf32> -> vector<8x8xf32>
    %56 = vector.extract_strided_slice %12 {offsets = [0, 16], sizes = [8, 8], strides = [1, 1]} : vector<8x96xf32> to vector<8x8xf32>
    %57 = arith.truncf %56 : vector<8x8xf32> to vector<8x8xbf16>
    %58 = vector.extract_strided_slice %12 {offsets = [0, 48], sizes = [8, 8], strides = [1, 1]} : vector<8x96xf32> to vector<8x8xf32>
    %59 = arith.truncf %58 : vector<8x8xf32> to vector<8x8xbf16>
    %60 = vector.extract_strided_slice %12 {offsets = [0, 80], sizes = [8, 8], strides = [1, 1]} : vector<8x96xf32> to vector<8x8xf32>
    %61 = arith.truncf %60 : vector<8x8xf32> to vector<8x8xbf16>
    %cst_18 = arith.constant dense<0.000000e+00> : vector<8x8xf32>
    %62 = tpu.matmul %57, %59, %cst_18 {dimension_numbers = #tpu.dot_dimension_numbers<[1], [1], [0], [0], [0, 0, 1, 0], [], []>} : vector<8x8xbf16>, vector<8x8xbf16>, vector<8x8xf32> -> vector<8x8xf32>
    %63 = vector.broadcast %13 : vector<1x8xf32> to vector<8x8xf32>
    %64 = arith.addf %62, %63 : vector<8x8xf32>
    %cst_19 = arith.constant dense<0xFF800000> : vector<8xf32>
    %65 = vector.multi_reduction <maximumf>, %64, %cst_19 [1] : vector<8x8xf32> to vector<8xf32>
    %66 = vector.shape_cast %65 : vector<8xf32> to vector<8x1xf32>
    %67 = vector.broadcast %66 : vector<8x1xf32> to vector<8x8xf32>
    %68 = arith.subf %64, %67 : vector<8x8xf32>
    %69 = math.exp %68 : vector<8x8xf32>
    %cst_20 = arith.constant dense<0.000000e+00> : vector<8xf32>
    %70 = vector.multi_reduction <add>, %69, %cst_20 [1] : vector<8x8xf32> to vector<8xf32>
    %71 = vector.shape_cast %70 : vector<8xf32> to vector<8x1xf32>
    %72 = tpu.reciprocal %71 {approx = true} : vector<8x1xf32> -> vector<8x1xf32>
    %73 = vector.broadcast %72 : vector<8x1xf32> to vector<8x8xf32>
    %74 = arith.mulf %69, %73 : vector<8x8xf32>
    %75 = arith.truncf %74 : vector<8x8xf32> to vector<8x8xbf16>
    %cst_21 = arith.constant dense<0.000000e+00> : vector<8x8xf32>
    %76 = tpu.matmul %75, %61, %cst_21 {dimension_numbers = #tpu.dot_dimension_numbers<[1], [0], [0], [1], [0, 0, 1, 1], [], []>} : vector<8x8xbf16>, vector<8x8xbf16>, vector<8x8xf32> -> vector<8x8xf32>
    %77 = vector.extract_strided_slice %12 {offsets = [0, 24], sizes = [8, 8], strides = [1, 1]} : vector<8x96xf32> to vector<8x8xf32>
    %78 = arith.truncf %77 : vector<8x8xf32> to vector<8x8xbf16>
    %79 = vector.extract_strided_slice %12 {offsets = [0, 56], sizes = [8, 8], strides = [1, 1]} : vector<8x96xf32> to vector<8x8xf32>
    %80 = arith.truncf %79 : vector<8x8xf32> to vector<8x8xbf16>
    %81 = vector.extract_strided_slice %12 {offsets = [0, 88], sizes = [8, 8], strides = [1, 1]} : vector<8x96xf32> to vector<8x8xf32>
    %82 = arith.truncf %81 : vector<8x8xf32> to vector<8x8xbf16>
    %cst_22 = arith.constant dense<0.000000e+00> : vector<8x8xf32>
    %83 = tpu.matmul %78, %80, %cst_22 {dimension_numbers = #tpu.dot_dimension_numbers<[1], [1], [0], [0], [0, 0, 1, 0], [], []>} : vector<8x8xbf16>, vector<8x8xbf16>, vector<8x8xf32> -> vector<8x8xf32>
    %84 = vector.broadcast %13 : vector<1x8xf32> to vector<8x8xf32>
    %85 = arith.addf %83, %84 : vector<8x8xf32>
    %cst_23 = arith.constant dense<0xFF800000> : vector<8xf32>
    %86 = vector.multi_reduction <maximumf>, %85, %cst_23 [1] : vector<8x8xf32> to vector<8xf32>
    %87 = vector.shape_cast %86 : vector<8xf32> to vector<8x1xf32>
    %88 = vector.broadcast %87 : vector<8x1xf32> to vector<8x8xf32>
    %89 = arith.subf %85, %88 : vector<8x8xf32>
    %90 = math.exp %89 : vector<8x8xf32>
    %cst_24 = arith.constant dense<0.000000e+00> : vector<8xf32>
    %91 = vector.multi_reduction <add>, %90, %cst_24 [1] : vector<8x8xf32> to vector<8xf32>
    %92 = vector.shape_cast %91 : vector<8xf32> to vector<8x1xf32>
    %93 = tpu.reciprocal %92 {approx = true} : vector<8x1xf32> -> vector<8x1xf32>
    %94 = vector.broadcast %93 : vector<8x1xf32> to vector<8x8xf32>
    %95 = arith.mulf %90, %94 : vector<8x8xf32>
    %96 = arith.truncf %95 : vector<8x8xf32> to vector<8x8xbf16>
    %cst_25 = arith.constant dense<0.000000e+00> : vector<8x8xf32>
    %97 = tpu.matmul %96, %82, %cst_25 {dimension_numbers = #tpu.dot_dimension_numbers<[1], [0], [0], [1], [0, 0, 1, 1], [], []>} : vector<8x8xbf16>, vector<8x8xbf16>, vector<8x8xf32> -> vector<8x8xf32>
    %98 = tpu.concatenate %34, %55, %76, %97 in 1 : vector<8x8xf32>, vector<8x8xf32>, vector<8x8xf32>, vector<8x8xf32> -> vector<8x32xf32>
    %99 = vector.extract_strided_slice %11 {offsets = [8, 0], sizes = [8, 96], strides = [1, 1]} : vector<16x96xf32> to vector<8x96xf32>
    %c1 = arith.constant 1 : index
    %c0_26 = arith.constant 0 : index
    %100 = vector.load %arg2[%c1, %c0_26] : memref<2x128xf32, #tpu.memory_space<vmem>>, vector<1x8xf32>
    %101 = vector.extract_strided_slice %99 {offsets = [0, 0], sizes = [8, 8], strides = [1, 1]} : vector<8x96xf32> to vector<8x8xf32>
    %102 = arith.truncf %101 : vector<8x8xf32> to vector<8x8xbf16>
    %103 = vector.extract_strided_slice %99 {offsets = [0, 32], sizes = [8, 8], strides = [1, 1]} : vector<8x96xf32> to vector<8x8xf32>
    %104 = arith.truncf %103 : vector<8x8xf32> to vector<8x8xbf16>
    %105 = vector.extract_strided_slice %99 {offsets = [0, 64], sizes = [8, 8], strides = [1, 1]} : vector<8x96xf32> to vector<8x8xf32>
    %106 = arith.truncf %105 : vector<8x8xf32> to vector<8x8xbf16>
    %cst_27 = arith.constant dense<0.000000e+00> : vector<8x8xf32>
    %107 = tpu.matmul %102, %104, %cst_27 {dimension_numbers = #tpu.dot_dimension_numbers<[1], [1], [0], [0], [0, 0, 1, 0], [], []>} : vector<8x8xbf16>, vector<8x8xbf16>, vector<8x8xf32> -> vector<8x8xf32>
    %108 = vector.broadcast %100 : vector<1x8xf32> to vector<8x8xf32>
    %109 = arith.addf %107, %108 : vector<8x8xf32>
    %cst_28 = arith.constant dense<0xFF800000> : vector<8xf32>
    %110 = vector.multi_reduction <maximumf>, %109, %cst_28 [1] : vector<8x8xf32> to vector<8xf32>
    %111 = vector.shape_cast %110 : vector<8xf32> to vector<8x1xf32>
    %112 = vector.broadcast %111 : vector<8x1xf32> to vector<8x8xf32>
    %113 = arith.subf %109, %112 : vector<8x8xf32>
    %114 = math.exp %113 : vector<8x8xf32>
    %cst_29 = arith.constant dense<0.000000e+00> : vector<8xf32>
    %115 = vector.multi_reduction <add>, %114, %cst_29 [1] : vector<8x8xf32> to vector<8xf32>
    %116 = vector.shape_cast %115 : vector<8xf32> to vector<8x1xf32>
    %117 = tpu.reciprocal %116 {approx = true} : vector<8x1xf32> -> vector<8x1xf32>
    %118 = vector.broadcast %117 : vector<8x1xf32> to vector<8x8xf32>
    %119 = arith.mulf %114, %118 : vector<8x8xf32>
    %120 = arith.truncf %119 : vector<8x8xf32> to vector<8x8xbf16>
    %cst_30 = arith.constant dense<0.000000e+00> : vector<8x8xf32>
    %121 = tpu.matmul %120, %106, %cst_30 {dimension_numbers = #tpu.dot_dimension_numbers<[1], [0], [0], [1], [0, 0, 1, 1], [], []>} : vector<8x8xbf16>, vector<8x8xbf16>, vector<8x8xf32> -> vector<8x8xf32>
    %122 = vector.extract_strided_slice %99 {offsets = [0, 8], sizes = [8, 8], strides = [1, 1]} : vector<8x96xf32> to vector<8x8xf32>
    %123 = arith.truncf %122 : vector<8x8xf32> to vector<8x8xbf16>
    %124 = vector.extract_strided_slice %99 {offsets = [0, 40], sizes = [8, 8], strides = [1, 1]} : vector<8x96xf32> to vector<8x8xf32>
    %125 = arith.truncf %124 : vector<8x8xf32> to vector<8x8xbf16>
    %126 = vector.extract_strided_slice %99 {offsets = [0, 72], sizes = [8, 8], strides = [1, 1]} : vector<8x96xf32> to vector<8x8xf32>
    %127 = arith.truncf %126 : vector<8x8xf32> to vector<8x8xbf16>
    %cst_31 = arith.constant dense<0.000000e+00> : vector<8x8xf32>
    %128 = tpu.matmul %123, %125, %cst_31 {dimension_numbers = #tpu.dot_dimension_numbers<[1], [1], [0], [0], [0, 0, 1, 0], [], []>} : vector<8x8xbf16>, vector<8x8xbf16>, vector<8x8xf32> -> vector<8x8xf32>
    %129 = vector.broadcast %100 : vector<1x8xf32> to vector<8x8xf32>
    %130 = arith.addf %128, %129 : vector<8x8xf32>
    %cst_32 = arith.constant dense<0xFF800000> : vector<8xf32>
    %131 = vector.multi_reduction <maximumf>, %130, %cst_32 [1] : vector<8x8xf32> to vector<8xf32>
    %132 = vector.shape_cast %131 : vector<8xf32> to vector<8x1xf32>
    %133 = vector.broadcast %132 : vector<8x1xf32> to vector<8x8xf32>
    %134 = arith.subf %130, %133 : vector<8x8xf32>
    %135 = math.exp %134 : vector<8x8xf32>
    %cst_33 = arith.constant dense<0.000000e+00> : vector<8xf32>
    %136 = vector.multi_reduction <add>, %135, %cst_33 [1] : vector<8x8xf32> to vector<8xf32>
    %137 = vector.shape_cast %136 : vector<8xf32> to vector<8x1xf32>
    %138 = tpu.reciprocal %137 {approx = true} : vector<8x1xf32> -> vector<8x1xf32>
    %139 = vector.broadcast %138 : vector<8x1xf32> to vector<8x8xf32>
    %140 = arith.mulf %135, %139 : vector<8x8xf32>
    %141 = arith.truncf %140 : vector<8x8xf32> to vector<8x8xbf16>
    %cst_34 = arith.constant dense<0.000000e+00> : vector<8x8xf32>
    %142 = tpu.matmul %141, %127, %cst_34 {dimension_numbers = #tpu.dot_dimension_numbers<[1], [0], [0], [1], [0, 0, 1, 1], [], []>} : vector<8x8xbf16>, vector<8x8xbf16>, vector<8x8xf32> -> vector<8x8xf32>
    %143 = vector.extract_strided_slice %99 {offsets = [0, 16], sizes = [8, 8], strides = [1, 1]} : vector<8x96xf32> to vector<8x8xf32>
    %144 = arith.truncf %143 : vector<8x8xf32> to vector<8x8xbf16>
    %145 = vector.extract_strided_slice %99 {offsets = [0, 48], sizes = [8, 8], strides = [1, 1]} : vector<8x96xf32> to vector<8x8xf32>
    %146 = arith.truncf %145 : vector<8x8xf32> to vector<8x8xbf16>
    %147 = vector.extract_strided_slice %99 {offsets = [0, 80], sizes = [8, 8], strides = [1, 1]} : vector<8x96xf32> to vector<8x8xf32>
    %148 = arith.truncf %147 : vector<8x8xf32> to vector<8x8xbf16>
    %cst_35 = arith.constant dense<0.000000e+00> : vector<8x8xf32>
    %149 = tpu.matmul %144, %146, %cst_35 {dimension_numbers = #tpu.dot_dimension_numbers<[1], [1], [0], [0], [0, 0, 1, 0], [], []>} : vector<8x8xbf16>, vector<8x8xbf16>, vector<8x8xf32> -> vector<8x8xf32>
    %150 = vector.broadcast %100 : vector<1x8xf32> to vector<8x8xf32>
    %151 = arith.addf %149, %150 : vector<8x8xf32>
    %cst_36 = arith.constant dense<0xFF800000> : vector<8xf32>
    %152 = vector.multi_reduction <maximumf>, %151, %cst_36 [1] : vector<8x8xf32> to vector<8xf32>
    %153 = vector.shape_cast %152 : vector<8xf32> to vector<8x1xf32>
    %154 = vector.broadcast %153 : vector<8x1xf32> to vector<8x8xf32>
    %155 = arith.subf %151, %154 : vector<8x8xf32>
    %156 = math.exp %155 : vector<8x8xf32>
    %cst_37 = arith.constant dense<0.000000e+00> : vector<8xf32>
    %157 = vector.multi_reduction <add>, %156, %cst_37 [1] : vector<8x8xf32> to vector<8xf32>
    %158 = vector.shape_cast %157 : vector<8xf32> to vector<8x1xf32>
    %159 = tpu.reciprocal %158 {approx = true} : vector<8x1xf32> -> vector<8x1xf32>
    %160 = vector.broadcast %159 : vector<8x1xf32> to vector<8x8xf32>
    %161 = arith.mulf %156, %160 : vector<8x8xf32>
    %162 = arith.truncf %161 : vector<8x8xf32> to vector<8x8xbf16>
    %cst_38 = arith.constant dense<0.000000e+00> : vector<8x8xf32>
    %163 = tpu.matmul %162, %148, %cst_38 {dimension_numbers = #tpu.dot_dimension_numbers<[1], [0], [0], [1], [0, 0, 1, 1], [], []>} : vector<8x8xbf16>, vector<8x8xbf16>, vector<8x8xf32> -> vector<8x8xf32>
    %164 = vector.extract_strided_slice %99 {offsets = [0, 24], sizes = [8, 8], strides = [1, 1]} : vector<8x96xf32> to vector<8x8xf32>
    %165 = arith.truncf %164 : vector<8x8xf32> to vector<8x8xbf16>
    %166 = vector.extract_strided_slice %99 {offsets = [0, 56], sizes = [8, 8], strides = [1, 1]} : vector<8x96xf32> to vector<8x8xf32>
    %167 = arith.truncf %166 : vector<8x8xf32> to vector<8x8xbf16>
    %168 = vector.extract_strided_slice %99 {offsets = [0, 88], sizes = [8, 8], strides = [1, 1]} : vector<8x96xf32> to vector<8x8xf32>
    %169 = arith.truncf %168 : vector<8x8xf32> to vector<8x8xbf16>
    %cst_39 = arith.constant dense<0.000000e+00> : vector<8x8xf32>
    %170 = tpu.matmul %165, %167, %cst_39 {dimension_numbers = #tpu.dot_dimension_numbers<[1], [1], [0], [0], [0, 0, 1, 0], [], []>} : vector<8x8xbf16>, vector<8x8xbf16>, vector<8x8xf32> -> vector<8x8xf32>
    %171 = vector.broadcast %100 : vector<1x8xf32> to vector<8x8xf32>
    %172 = arith.addf %170, %171 : vector<8x8xf32>
    %cst_40 = arith.constant dense<0xFF800000> : vector<8xf32>
    %173 = vector.multi_reduction <maximumf>, %172, %cst_40 [1] : vector<8x8xf32> to vector<8xf32>
    %174 = vector.shape_cast %173 : vector<8xf32> to vector<8x1xf32>
    %175 = vector.broadcast %174 : vector<8x1xf32> to vector<8x8xf32>
    %176 = arith.subf %172, %175 : vector<8x8xf32>
    %177 = math.exp %176 : vector<8x8xf32>
    %cst_41 = arith.constant dense<0.000000e+00> : vector<8xf32>
    %178 = vector.multi_reduction <add>, %177, %cst_41 [1] : vector<8x8xf32> to vector<8xf32>
    %179 = vector.shape_cast %178 : vector<8xf32> to vector<8x1xf32>
    %180 = tpu.reciprocal %179 {approx = true} : vector<8x1xf32> -> vector<8x1xf32>
    %181 = vector.broadcast %180 : vector<8x1xf32> to vector<8x8xf32>
    %182 = arith.mulf %177, %181 : vector<8x8xf32>
    %183 = arith.truncf %182 : vector<8x8xf32> to vector<8x8xbf16>
    %cst_42 = arith.constant dense<0.000000e+00> : vector<8x8xf32>
    %184 = tpu.matmul %183, %169, %cst_42 {dimension_numbers = #tpu.dot_dimension_numbers<[1], [0], [0], [1], [0, 0, 1, 1], [], []>} : vector<8x8xbf16>, vector<8x8xbf16>, vector<8x8xf32> -> vector<8x8xf32>
    %185 = tpu.concatenate %121, %142, %163, %184 in 1 : vector<8x8xf32>, vector<8x8xf32>, vector<8x8xf32>, vector<8x8xf32> -> vector<8x32xf32>
    %186 = tpu.concatenate %98, %185 in 0 : vector<8x32xf32>, vector<8x32xf32> -> vector<16x32xf32>
    %187 = arith.truncf %186 : vector<16x32xf32> to vector<16x32xbf16>
    %c0_43 = arith.constant 0 : index
    %c0_44 = arith.constant 0 : index
    %c0_45 = arith.constant 0 : index
    %188 = vector.load %arg7[%c0_43, %c0_44, %c0_45] : memref<1x32x32xbf16, #tpu.memory_space<vmem>>, vector<1x32x32xbf16>
    %189 = vector.shape_cast %188 : vector<1x32x32xbf16> to vector<32x32xbf16>
    %cst_46 = arith.constant dense<0.000000e+00> : vector<16x32xf32>
    %190 = tpu.matmul %187, %189, %cst_46 {dimension_numbers = #tpu.dot_dimension_numbers<[1], [0], [0], [1], [0, 0, 1, 1], [], []>} : vector<16x32xbf16>, vector<32x32xbf16>, vector<16x32xf32> -> vector<16x32xf32>
    %c0_47 = arith.constant 0 : index
    %c0_48 = arith.constant 0 : index
    %c0_49 = arith.constant 0 : index
    %191 = vector.load %arg8[%c0_47, %c0_48, %c0_49] : memref<1x1x32xf32, #tpu.memory_space<vmem>>, vector<1x1x32xf32>
    %192 = vector.shape_cast %191 : vector<1x1x32xf32> to vector<1x32xf32>
    %193 = vector.broadcast %192 : vector<1x32xf32> to vector<16x32xf32>
    %194 = arith.addf %190, %193 : vector<16x32xf32>
    %195 = arith.addf %194, %3 : vector<16x32xf32>
    %c0_50 = arith.constant 0 : index
    %c0_51 = arith.constant 0 : index
    %c0_52 = arith.constant 0 : index
    %196 = vector.load %arg9[%c0_50, %c0_51, %c0_52] : memref<1x1x32xf32, #tpu.memory_space<vmem>>, vector<1x1x32xf32>
    %197 = vector.shape_cast %196 : vector<1x1x32xf32> to vector<1x32xf32>
    %c0_53 = arith.constant 0 : index
    %c0_54 = arith.constant 0 : index
    %c0_55 = arith.constant 0 : index
    %198 = vector.load %arg10[%c0_53, %c0_54, %c0_55] : memref<1x1x32xf32, #tpu.memory_space<vmem>>, vector<1x1x32xf32>
    %199 = vector.shape_cast %198 : vector<1x1x32xf32> to vector<1x32xf32>
    %cst_56 = arith.constant dense<0.000000e+00> : vector<16xf32>
    %200 = vector.multi_reduction <add>, %195, %cst_56 [1] : vector<16x32xf32> to vector<16xf32>
    %201 = vector.shape_cast %200 : vector<16xf32> to vector<16x1xf32>
    %cst_57 = arith.constant 3.200000e+01 : f32
    %202 = vector.broadcast %cst_57 : f32 to vector<16x1xf32>
    %203 = arith.divf %201, %202 : vector<16x1xf32>
    %204 = vector.broadcast %203 : vector<16x1xf32> to vector<16x32xf32>
    %205 = arith.subf %195, %204 : vector<16x32xf32>
    %206 = arith.mulf %205, %205 : vector<16x32xf32>
    %cst_58 = arith.constant dense<0.000000e+00> : vector<16xf32>
    %207 = vector.multi_reduction <add>, %206, %cst_58 [1] : vector<16x32xf32> to vector<16xf32>
    %208 = vector.shape_cast %207 : vector<16xf32> to vector<16x1xf32>
    %cst_59 = arith.constant 3.200000e+01 : f32
    %209 = vector.broadcast %cst_59 : f32 to vector<16x1xf32>
    %210 = arith.divf %208, %209 : vector<16x1xf32>
    %211 = vector.broadcast %203 : vector<16x1xf32> to vector<16x32xf32>
    %212 = arith.subf %195, %211 : vector<16x32xf32>
    %cst_60 = arith.constant 9.99999996E-13 : f32
    %213 = vector.broadcast %cst_60 : f32 to vector<16x1xf32>
    %214 = arith.addf %210, %213 : vector<16x1xf32>
    %215 = math.rsqrt %214 : vector<16x1xf32>
    %216 = vector.broadcast %215 : vector<16x1xf32> to vector<16x32xf32>
    %217 = arith.mulf %212, %216 : vector<16x32xf32>
    %218 = vector.broadcast %197 : vector<1x32xf32> to vector<16x32xf32>
    %219 = arith.mulf %217, %218 : vector<16x32xf32>
    %220 = vector.broadcast %199 : vector<1x32xf32> to vector<16x32xf32>
    %221 = arith.addf %219, %220 : vector<16x32xf32>
    %222 = arith.truncf %221 : vector<16x32xf32> to vector<16x32xbf16>
    %c0_61 = arith.constant 0 : index
    %c0_62 = arith.constant 0 : index
    %c0_63 = arith.constant 0 : index
    %223 = vector.load %arg11[%c0_61, %c0_62, %c0_63] : memref<1x32x128xbf16, #tpu.memory_space<vmem>>, vector<1x32x128xbf16>
    %224 = vector.shape_cast %223 : vector<1x32x128xbf16> to vector<32x128xbf16>
    %cst_64 = arith.constant dense<0.000000e+00> : vector<16x128xf32>
    %225 = tpu.matmul %222, %224, %cst_64 {dimension_numbers = #tpu.dot_dimension_numbers<[1], [0], [0], [1], [0, 0, 1, 1], [], []>} : vector<16x32xbf16>, vector<32x128xbf16>, vector<16x128xf32> -> vector<16x128xf32>
    %c0_65 = arith.constant 0 : index
    %c0_66 = arith.constant 0 : index
    %c0_67 = arith.constant 0 : index
    %226 = vector.load %arg12[%c0_65, %c0_66, %c0_67] : memref<1x1x128xf32, #tpu.memory_space<vmem>>, vector<1x1x128xf32>
    %227 = vector.shape_cast %226 : vector<1x1x128xf32> to vector<1x128xf32>
    %228 = vector.broadcast %227 : vector<1x128xf32> to vector<16x128xf32>
    %229 = arith.addf %225, %228 : vector<16x128xf32>
    %cst_68 = arith.constant 5.000000e-01 : f32
    %230 = vector.broadcast %cst_68 : f32 to vector<16x128xf32>
    %231 = arith.mulf %230, %229 : vector<16x128xf32>
    %cst_69 = arith.constant 4.471500e-02 : f32
    %232 = vector.broadcast %cst_69 : f32 to vector<16x128xf32>
    %233 = arith.mulf %232, %229 : vector<16x128xf32>
    %234 = arith.mulf %233, %229 : vector<16x128xf32>
    %235 = arith.mulf %234, %229 : vector<16x128xf32>
    %236 = arith.addf %229, %235 : vector<16x128xf32>
    %cst_70 = arith.constant 0.797884583 : f32
    %237 = vector.broadcast %cst_70 : f32 to vector<16x128xf32>
    %238 = arith.mulf %237, %236 : vector<16x128xf32>
    %239 = math.tanh %238 : vector<16x128xf32>
    %cst_71 = arith.constant 1.000000e+00 : f32
    %240 = vector.broadcast %cst_71 : f32 to vector<16x128xf32>
    %241 = arith.addf %240, %239 : vector<16x128xf32>
    %242 = arith.mulf %231, %241 : vector<16x128xf32>
    %243 = arith.truncf %242 : vector<16x128xf32> to vector<16x128xbf16>
    %c0_72 = arith.constant 0 : index
    %c0_73 = arith.constant 0 : index
    %c0_74 = arith.constant 0 : index
    %244 = vector.load %arg13[%c0_72, %c0_73, %c0_74] : memref<1x128x32xbf16, #tpu.memory_space<vmem>>, vector<1x128x32xbf16>
    %245 = vector.shape_cast %244 : vector<1x128x32xbf16> to vector<128x32xbf16>
    %cst_75 = arith.constant dense<0.000000e+00> : vector<16x32xf32>
    %246 = tpu.matmul %243, %245, %cst_75 {dimension_numbers = #tpu.dot_dimension_numbers<[1], [0], [0], [1], [0, 0, 1, 1], [], []>} : vector<16x128xbf16>, vector<128x32xbf16>, vector<16x32xf32> -> vector<16x32xf32>
    %c0_76 = arith.constant 0 : index
    %c0_77 = arith.constant 0 : index
    %c0_78 = arith.constant 0 : index
    %247 = vector.load %arg14[%c0_76, %c0_77, %c0_78] : memref<1x1x32xf32, #tpu.memory_space<vmem>>, vector<1x1x32xf32>
    %248 = vector.shape_cast %247 : vector<1x1x32xf32> to vector<1x32xf32>
    %249 = vector.broadcast %248 : vector<1x32xf32> to vector<16x32xf32>
    %250 = arith.addf %246, %249 : vector<16x32xf32>
    %251 = arith.addf %250, %221 : vector<16x32xf32>
    %c0_79 = arith.constant 0 : index
    %c0_80 = arith.constant 0 : index
    %c0_81 = arith.constant 0 : index
    %252 = vector.load %arg15[%c0_79, %c0_80, %c0_81] : memref<1x1x32xf32, #tpu.memory_space<vmem>>, vector<1x1x32xf32>
    %253 = vector.shape_cast %252 : vector<1x1x32xf32> to vector<1x32xf32>
    %c0_82 = arith.constant 0 : index
    %c0_83 = arith.constant 0 : index
    %c0_84 = arith.constant 0 : index
    %254 = vector.load %arg16[%c0_82, %c0_83, %c0_84] : memref<1x1x32xf32, #tpu.memory_space<vmem>>, vector<1x1x32xf32>
    %255 = vector.shape_cast %254 : vector<1x1x32xf32> to vector<1x32xf32>
    %cst_85 = arith.constant dense<0.000000e+00> : vector<16xf32>
    %256 = vector.multi_reduction <add>, %251, %cst_85 [1] : vector<16x32xf32> to vector<16xf32>
    %257 = vector.shape_cast %256 : vector<16xf32> to vector<16x1xf32>
    %cst_86 = arith.constant 3.200000e+01 : f32
    %258 = vector.broadcast %cst_86 : f32 to vector<16x1xf32>
    %259 = arith.divf %257, %258 : vector<16x1xf32>
    %260 = vector.broadcast %259 : vector<16x1xf32> to vector<16x32xf32>
    %261 = arith.subf %251, %260 : vector<16x32xf32>
    %262 = arith.mulf %261, %261 : vector<16x32xf32>
    %cst_87 = arith.constant dense<0.000000e+00> : vector<16xf32>
    %263 = vector.multi_reduction <add>, %262, %cst_87 [1] : vector<16x32xf32> to vector<16xf32>
    %264 = vector.shape_cast %263 : vector<16xf32> to vector<16x1xf32>
    %cst_88 = arith.constant 3.200000e+01 : f32
    %265 = vector.broadcast %cst_88 : f32 to vector<16x1xf32>
    %266 = arith.divf %264, %265 : vector<16x1xf32>
    %267 = vector.broadcast %259 : vector<16x1xf32> to vector<16x32xf32>
    %268 = arith.subf %251, %267 : vector<16x32xf32>
    %cst_89 = arith.constant 9.99999996E-13 : f32
    %269 = vector.broadcast %cst_89 : f32 to vector<16x1xf32>
    %270 = arith.addf %266, %269 : vector<16x1xf32>
    %271 = math.rsqrt %270 : vector<16x1xf32>
    %272 = vector.broadcast %271 : vector<16x1xf32> to vector<16x32xf32>
    %273 = arith.mulf %268, %272 : vector<16x32xf32>
    %274 = vector.broadcast %253 : vector<1x32xf32> to vector<16x32xf32>
    %275 = arith.mulf %273, %274 : vector<16x32xf32>
    %276 = vector.broadcast %255 : vector<1x32xf32> to vector<16x32xf32>
    %277 = arith.addf %275, %276 : vector<16x32xf32>
    %c0_90 = arith.constant 0 : index
    %c0_91 = arith.constant 0 : index
    %278 = vector.load %arg22[%c0_90, %c0_91] : memref<16x32xf32, #tpu.memory_space<vmem>>, vector<16x32xf32>
    tpu.vector_store %arg22[%c0_90, %c0_91], %277 {strides = array<i32>} : memref<16x32xf32, #tpu.memory_space<vmem>>, vector<16x32xf32>,
    %c1_i32 = arith.constant 1 : i32
    %279 = arith.cmpi eq, %arg0, %c1_i32 : i32
    %280 = arith.extui %279 : i1 to i32
    %c0_i32_92 = arith.constant 0 : i32
    %281 = arith.cmpi ne, %280, %c0_i32_92 : i32
    scf.if %281 {
      %282 = vector.extract_strided_slice %277 {offsets = [0, 0], sizes = [1, 32], strides = [1, 1]} : vector<16x32xf32> to vector<1x32xf32>
      %283 = vector.extract_strided_slice %277 {offsets = [8, 0], sizes = [1, 32], strides = [1, 1]} : vector<16x32xf32> to vector<1x32xf32>
      %284 = tpu.concatenate %282, %283 in 0 : vector<1x32xf32>, vector<1x32xf32> -> vector<2x32xf32>
      %285 = arith.truncf %284 : vector<2x32xf32> to vector<2x32xbf16>
      %c0_93 = arith.constant 0 : index
      %c0_94 = arith.constant 0 : index
      %286 = vector.load %arg17[%c0_93, %c0_94] : memref<32x32xbf16, #tpu.memory_space<vmem>>, vector<32x32xbf16>
      %cst_95 = arith.constant dense<0.000000e+00> : vector<2x32xf32>
      %287 = tpu.matmul %285, %286, %cst_95 {dimension_numbers = #tpu.dot_dimension_numbers<[1], [0], [0], [1], [0, 0, 1, 1], [], []>} : vector<2x32xbf16>, vector<32x32xbf16>, vector<2x32xf32> -> vector<2x32xf32>
      %c0_96 = arith.constant 0 : index
      %c0_97 = arith.constant 0 : index
      %288 = vector.load %arg18[%c0_96, %c0_97] : memref<1x32xf32, #tpu.memory_space<vmem>>, vector<1x32xf32>
      %289 = vector.broadcast %288 : vector<1x32xf32> to vector<2x32xf32>
      %290 = arith.addf %287, %289 : vector<2x32xf32>
      %291 = math.tanh %290 : vector<2x32xf32>
      %292 = arith.truncf %291 : vector<2x32xf32> to vector<2x32xbf16>
      %c0_98 = arith.constant 0 : index
      %c0_99 = arith.constant 0 : index
      %293 = vector.load %arg19[%c0_98, %c0_99] : memref<32x128xbf16, #tpu.memory_space<vmem>>, vector<32x128xbf16>
      %cst_100 = arith.constant dense<0.000000e+00> : vector<2x128xf32>
      %294 = tpu.matmul %292, %293, %cst_100 {dimension_numbers = #tpu.dot_dimension_numbers<[1], [0], [0], [1], [0, 0, 1, 1], [], []>} : vector<2x32xbf16>, vector<32x128xbf16>, vector<2x128xf32> -> vector<2x128xf32>
      %c0_101 = arith.constant 0 : index
      %c0_102 = arith.constant 0 : index
      %295 = vector.load %arg20[%c0_101, %c0_102] : memref<1x128xf32, #tpu.memory_space<vmem>>, vector<1x128xf32>
      %296 = vector.broadcast %295 : vector<1x128xf32> to vector<2x128xf32>
      %297 = arith.addf %294, %296 : vector<2x128xf32>
      %cst_103 = arith.constant 0.000000e+00 : f32
      %298 = vector.broadcast %cst_103 : f32 to vector<6x128xf32>
      %299 = tpu.concatenate %297, %298 in 0 : vector<2x128xf32>, vector<6x128xf32> -> vector<8x128xf32>
      %c0_104 = arith.constant 0 : index
      %c0_105 = arith.constant 0 : index
      %300 = vector.load %arg21[%c0_104, %c0_105] : memref<8x128xf32, #tpu.memory_space<vmem>>, vector<8x128xf32>
      tpu.vector_store %arg21[%c0_104, %c0_105], %299 {strides = array<i32>} : memref<8x128xf32, #tpu.memory_space<vmem>>, vector<8x128xf32>,
    } else {
    }
    return
  }
  func.func @transform_0(%arg0: i32) -> (i32, i32) {
    %c0_i32 = arith.constant 0 : i32
    %c0_i32_0 = arith.constant 0 : i32
    %c0_i32_1 = arith.constant 0 : i32
    return %c0_i32, %c0_i32_0 : i32, i32
  }
  func.func @transform_1(%arg0: i32) -> (i32, i32) {
    %c0_i32 = arith.constant 0 : i32
    %c0_i32_0 = arith.constant 0 : i32
    %c0_i32_1 = arith.constant 0 : i32
    return %c0_i32, %c0_i32_0 : i32, i32
  }
  func.func @transform_2(%arg0: i32) -> (i32, i32) {
    %c0_i32 = arith.constant 0 : i32
    %c0_i32_0 = arith.constant 0 : i32
    %c0_i32_1 = arith.constant 0 : i32
    return %c0_i32, %c0_i32_0 : i32, i32
  }
  func.func @transform_3(%arg0: i32) -> (i32, i32) {
    %c0_i32 = arith.constant 0 : i32
    %c0_i32_0 = arith.constant 0 : i32
    %c0_i32_1 = arith.constant 0 : i32
    return %c0_i32, %c0_i32_0 : i32, i32
  }
  func.func @transform_4(%arg0: i32) -> (i32, i32, i32) {
    %c0_i32 = arith.constant 0 : i32
    %c0_i32_0 = arith.constant 0 : i32
    %c0_i32_1 = arith.constant 0 : i32
    return %arg0, %c0_i32, %c0_i32_0 : i32, i32, i32
  }
  func.func @transform_5(%arg0: i32) -> (i32, i32, i32) {
    %c0_i32 = arith.constant 0 : i32
    %c0_i32_0 = arith.constant 0 : i32
    %c0_i32_1 = arith.constant 0 : i32
    return %arg0, %c0_i32, %c0_i32_0 : i32, i32, i32
  }
  func.func @transform_6(%arg0: i32) -> (i32, i32, i32) {
    %c0_i32 = arith.constant 0 : i32
    %c0_i32_0 = arith.constant 0 : i32
    %c0_i32_1 = arith.constant 0 : i32
    return %arg0, %c0_i32, %c0_i32_0 : i32, i32, i32
  }
  func.func @transform_7(%arg0: i32) -> (i32, i32, i32) {
    %c0_i32 = arith.constant 0 : i32
    %c0_i32_0 = arith.constant 0 : i32
    %c0_i32_1 = arith.constant 0 : i32
    return %arg0, %c0_i32, %c0_i32_0 : i32, i32, i32
  }
  func.func @transform_8(%arg0: i32) -> (i32, i32, i32) {
    %c0_i32 = arith.constant 0 : i32
    %c0_i32_0 = arith.constant 0 : i32
    %c0_i32_1 = arith.constant 0 : i32
    return %arg0, %c0_i32, %c0_i32_0 : i32, i32, i32
  }
  func.func @transform_9(%arg0: i32) -> (i32, i32, i32) {
    %c0_i32 = arith.constant 0 : i32
    %c0_i32_0 = arith.constant 0 : i32
    %c0_i32_1 = arith.constant 0 : i32
    return %arg0, %c0_i32, %c0_i32_0 : i32, i32, i32
  }
  func.func @transform_10(%arg0: i32) -> (i32, i32, i32) {
    %c0_i32 = arith.constant 0 : i32
    %c0_i32_0 = arith.constant 0 : i32
    %c0_i32_1 = arith.constant 0 : i32
    return %arg0, %c0_i32, %c0_i32_0 : i32, i32, i32
  }
  func.func @transform_11(%arg0: i32) -> (i32, i32, i32) {
    %c0_i32 = arith.constant 0 : i32
    %c0_i32_0 = arith.constant 0 : i32
    %c0_i32_1 = arith.constant 0 : i32
    return %arg0, %c0_i32, %c0_i32_0 : i32, i32, i32
  }
  func.func @transform_12(%arg0: i32) -> (i32, i32, i32) {
    %c0_i32 = arith.constant 0 : i32
    %c0_i32_0 = arith.constant 0 : i32
    %c0_i32_1 = arith.constant 0 : i32
    return %arg0, %c0_i32, %c0_i32_0 : i32, i32, i32
  }
  func.func @transform_13(%arg0: i32) -> (i32, i32, i32) {
    %c0_i32 = arith.constant 0 : i32
    %c0_i32_0 = arith.constant 0 : i32
    %c0_i32_1 = arith.constant 0 : i32
    return %arg0, %c0_i32, %c0_i32_0 : i32, i32, i32
  }
  func.func @transform_14(%arg0: i32) -> (i32, i32, i32) {
    %c0_i32 = arith.constant 0 : i32
    %c0_i32_0 = arith.constant 0 : i32
    %c0_i32_1 = arith.constant 0 : i32
    return %arg0, %c0_i32, %c0_i32_0 : i32, i32, i32
  }
  func.func @transform_15(%arg0: i32) -> (i32, i32, i32) {
    %c0_i32 = arith.constant 0 : i32
    %c0_i32_0 = arith.constant 0 : i32
    %c0_i32_1 = arith.constant 0 : i32
    return %arg0, %c0_i32, %c0_i32_0 : i32, i32, i32
  }
  func.func @transform_16(%arg0: i32) -> (i32, i32) {
    %c0_i32 = arith.constant 0 : i32
    %c0_i32_0 = arith.constant 0 : i32
    %c0_i32_1 = arith.constant 0 : i32
    return %c0_i32, %c0_i32_0 : i32, i32
  }
  func.func @transform_17(%arg0: i32) -> (i32, i32) {
    %c0_i32 = arith.constant 0 : i32
    %c0_i32_0 = arith.constant 0 : i32
    %c0_i32_1 = arith.constant 0 : i32
    return %c0_i32, %c0_i32_0 : i32, i32
  }
  func.func @transform_18(%arg0: i32) -> (i32, i32) {
    %c0_i32 = arith.constant 0 : i32
    %c0_i32_0 = arith.constant 0 : i32
    %c0_i32_1 = arith.constant 0 : i32
    return %c0_i32, %c0_i32_0 : i32, i32
  }
  func.func @transform_19(%arg0: i32) -> (i32, i32) {
    %c0_i32 = arith.constant 0 : i32
    %c0_i32_0 = arith.constant 0 : i32
    %c0_i32_1 = arith.constant 0 : i32
    return %c0_i32, %c0_i32_0 : i32, i32
  }
  func.func @transform_20(%arg0: i32) -> (i32, i32) {
    %c0_i32 = arith.constant 0 : i32
    %c0_i32_0 = arith.constant 0 : i32
    %c0_i32_1 = arith.constant 0 : i32
    return %c0_i32, %c0_i32_0 : i32, i32
  }
}

</mosaic_0001>

<bundles_post_ra>
// kernel: bert_sentiment_forward.1
= control target key start
LH: loop header
LB: loop body
LE: loop exit
PB: predicated region body
PF: predicated region fallthrough
CT: control target
= control target key end

     0   :  { %s3413_s0 = inlined_call_operand.vmem [shape: bf16[16,32], index: 0, kind: input, shape index: {}]   ;;  %s3414_s1 = inlined_call_operand.vmem [shape: f32[2,128], index: 1, kind: input, shape index: {}]   ;;  %s3415_s2 = inlined_call_operand.vmem [shape: f32[1,32], index: 2, kind: input, shape index: {}]   ;;  %s3416_s3 = inlined_call_operand.vmem [shape: f32[1,32], index: 3, kind: input, shape index: {}]   ;;  %s3417_s4 = inlined_call_operand.vmem [shape: bf16[2,32,96], index: 4, kind: input, shape index: {}]   ;;  %s3418_s5 = inlined_call_operand.vmem [shape: f32[2,1,96], index: 5, kind: input, shape index: {}]   ;;  %s3419_s6 = inlined_call_operand.vmem [shape: bf16[2,32,32], index: 6, kind: input, shape index: {}]   ;;  %s3420_s7 = inlined_call_operand.vmem [shape: f32[2,1,32], index: 7, kind: input, shape index: {}]   ;;  %s3421_s8 = inlined_call_operand.vmem [shape: f32[2,1,32], index: 8, kind: input, shape index: {}]   ;;  %s3422_s9 = inlined_call_operand.vmem [shape: f32[2,1,32], index: 9, kind: input, shape index: {}]   ;;  %s3423_s10 = inlined_call_operand.vmem [shape: bf16[2,32,128], index: 10, kind: input, shape index: {}]   ;;  %s3424_s11 = inlined_call_operand.vmem [shape: f32[2,1,128], index: 11, kind: input, shape index: {}]   ;;  %s3425_s12 = inlined_call_operand.vmem [shape: bf16[2,128,32], index: 12, kind: input, shape index: {}]   ;;  %s3426_s13 = inlined_call_operand.vmem [shape: f32[2,1,32], index: 13, kind: input, shape index: {}]   ;;  %s3427_s14 = inlined_call_operand.vmem [shape: f32[2,1,32], index: 14, kind: input, shape index: {}]   ;;  %s3428_s15 = inlined_call_operand.vmem [shape: f32[2,1,32], index: 15, kind: input, shape index: {}]   ;;  %s3429_s16 = inlined_call_operand.vmem [shape: bf16[32,32], index: 16, kind: input, shape index: {}]   ;;  %s3430_s17 = inlined_call_operand.vmem [shape: f32[1,32], index: 17, kind: input, shape index: {}]   ;;  %s3431_s18 = inlined_call_operand.vmem [shape: bf16[32,128], index: 18, kind: input, shape index: {}]   ;;  %s3432_s19 = inlined_call_operand.vmem [shape: f32[1,128], index: 19, kind: input, shape index: {}]   ;;  %s3433_s20 = inlined_call_operand.vmem [shape: f32[8,128], index: 20, kind: output, shape index: {}]  }
   0x1   :  { %3438 = sst [smem:[#allocation4_spill]] %s3413_s0 }
   0x2   :  { %3439 = sst [smem:[#allocation5_spill]] %s3414_s1  ;;  %s3013_s1 = smov 0  }
   0x3   :  { %3440 = sst [smem:[#allocation6_spill]] %s3415_s2 }
   0x4   :  { %3441 = sst [smem:[#allocation7_spill]] %s3416_s3 }
   0x5   :  { %3442 = sst [smem:[#allocation8_spill]] %s3417_s4 }
   0x6   :  { %3443 = sst [smem:[#allocation9_spill]] %s3419_s6 }
   0x7   :  { %3444 = sst [smem:[#allocation10_spill]] %s3429_s16 }
   0x8   :  { %3445 = sst [smem:[#allocation11_spill]] %s3430_s17 }
   0x9   :  { %3446 = sst [smem:[#allocation12_spill]] %s3431_s18 }
   0xa   :  { %3447 = sst [smem:[#allocation13_spill]] %s3432_s19 }
   0xb   :  { %3448 = sst [smem:[#allocation14_spill]] %s3433_s20 }
   0xc LB: > { %3449 = sst [smem:[#allocation3_spill]] %s2888_s1  ;;  %s3019_s22 = sadd.s32 4294967295, %s2888_s1   ;;  %s2888_s1 = sphi %s3013_s1, %s30_s1  }
   0xd   : > { %p2487_p0 = scmp.ge.s32.totalorder %s2888_s1, 1  ;;  %p651_p1 = scmp.lt.s32.totalorder %s2888_s1, 3 }
   0xf   : > { %p652_p2 = pnand %p2487_p0, %p651_p1 }
  0x10   : > { %p743_p3 = scmp.lt.s32.totalorder (!%p652_p2), %s3019_s22, 1  ;;  %s3450_s28 = sld [smem:[#allocation8_spill]] (!%p652_p2) }
  0x11   : > { %655 = sbr.rel (%p652_p2) target bundleno = 3425 (0xd61), region = 100  ;;  %s3451_s6 = sld [smem:[#allocation9_spill]] (!%p652_p2) }
  0x12   : > { %p2496_p4 = scmp.ne.s32.totalorder (!%p652_p2), %s3019_s22, 0 }
  0x18   : > { %s3025_s23 = scalar_select %p743_p3, %s3019_s22, 1 }
  0x19   : > { %791 = sbr.rel (%p2496_p4) target bundleno = 352 (0x160), region = 104  ;;  %s3452_s1 = sld [smem:[#allocation4_spill]] (!%p2496_p4)  ;;  %vm798_vm0 = vcmask (!%p2496_p4), 261120  }
  0x1a   : > { %s2553_s24 = sshll.u32 %s3025_s23, 4  ;;  %s2556_s16 = sshll.u32 %s3025_s23, 6 }
  0x1b   : > { %s3035_s4 = scalar_lea.vmem %s3450_s28, %s2553_s24  ;;  %s3040_s0 = scalar_lea.vmem %s3451_s6, %s2553_s24 }
  0x1c   : > { %s3057_s28 = scalar_lea.vmem %s3423_s10, %s2553_s24  ;;  %s772_s6 = scalar_lea.vmem %s3424_s11, %s3025_s23 }
  0x1d   : > { %s3067_s20 = scalar_lea.vmem %s3425_s12, %s2556_s16  ;;  %s780_s2 = scalar_lea.vmem %s3426_s13, %s3025_s23 }
  0x1e   : > { %s783_s26 = scalar_lea.vmem %s3427_s14, %s3025_s23  ;;  %s786_s18 = scalar_lea.vmem %s3428_s15, %s3025_s23 }
  0x1f   : > { %v2558_v0 = vld [vmem:[%s3452_s1] sm:$0xff] (!%p2496_p4)   ;;  %s3453_s21 = sld [smem:[#allocation6_spill]] (!%p2496_p4)  ;;  %s3454_s25 = sld [smem:[#allocation7_spill]] (!%p2496_p4) }
  0x20   : > { %v2559_v1 = vunpack.c.l.bf16 %v2558_v0  ;;  %v2560_v2 = vunpack.c.h.bf16 %v2558_v0 }
  0x22   : > { %v799_v3 = vsel %vm798_vm0, %v2559_v1, 0.0  ;;  %v802_v4 = vsel %vm798_vm0, %v2560_v2, 0.0 }
  0x23   : > { %800 = vadd.xlane.f32.xlu0 %v799_v3 }
  0x25   : > { %v2497_v22 = vld [vmem:[%s3453_s21] ss:$0 sm:$0xff] }
  0x26   : > { %v2498_v24 = vld [vmem:[%s3454_s25] ss:$0 sm:$0xff] }
  0x27   : > { %803 = vadd.xlane.f32.xlu0 %v802_v4 }
  0xb0   : > { %v801_v5 = vpop.xlane.xlu0 %800 }
  0xb1   : > { %v806_v6 = vmul.f32 0.03125, %v801_v5 }
  0xb3   : > { %v808_v7 = vsub.f32 %v2559_v1, %v806_v6 }
  0xb4   : > { %v804_v8 = vpop.xlane.xlu0 %803 }
  0xb5   : > { %v807_v9 = vmul.f32 0.03125, %v804_v8  ;;  %v810_v10 = vmul.f32 %v808_v7, %v808_v7 }
  0xb7   : > { %v809_v11 = vsub.f32 %v2560_v2, %v807_v9  ;;  %v812_v12 = vsel %vm798_vm0, %v810_v10, 0.0 }
  0xb8   : > { %813 = vadd.xlane.f32.xlu1 %v812_v12 }
  0xb9   : > { %v811_v13 = vmul.f32 %v809_v11, %v809_v11 }
  0xbb   : > { %v815_v14 = vsel %vm798_vm0, %v811_v13, 0.0 }
  0xbc   : > { %816 = vadd.xlane.f32.xlu1 %v815_v14 }
 0x145   : > { %v814_v15 = vpop.xlane.xlu1 %813 }
 0x146   : > { %v818_v16 = vmul.f32 0.03125, %v814_v15 }
 0x148   : > { %v820_v17 = vadd.f32 1e-12, %v818_v16 }
 0x149   : > { %v817_v18 = vpop.xlane.xlu1 %816 }
 0x14a   : > { %2799 = vrsqrt.f32 %v820_v17  ;;  %v819_v19 = vmul.f32 0.03125, %v817_v18 }
 0x14c   : > { %v821_v20 = vadd.f32 1e-12, %v819_v19 }
 0x14e   : > { %2801 = vrsqrt.f32 %v821_v20 }
 0x154   : > { %v2800_v21 = vpop.eup %2799 }
 0x155   : > { %v824_v23 = vmul.f32 %v2800_v21, %v808_v7 }
 0x157   : > { %v832_v25 = vmul.f32 %v2497_v22, %v824_v23 }
 0x158   : > { %v2802_v26 = vpop.eup %2801 }
 0x159   : > { %v840_v27 = vadd.f32 %v2498_v24, %v832_v25  ;;  %v825_v28 = vmul.f32 %v2802_v26, %v809_v11 }
 0x15b   : > { %842 = vst.msk [vmem:[#allocation2] sm:$0xff] %vm798_vm0, %v840_v27  ;;  %v833_v29 = vmul.f32 %v2497_v22, %v825_v28 }
 0x15d   : > { %v841_v30 = vadd.f32 %v2498_v24, %v833_v29 }
 0x15f   : > { %843 = vst.msk [vmem:[#allocation2 + $0x8] sm:$0xff] %vm798_vm0, %v841_v30 }
 0x160 PF: > { %v2818_v31 = vld [vmem:[%s3035_s4] sm:$0xff]   ;;  %v2890_v32 = vmov 0.0   ;;  %v2819_v33 = vld [vmem:[%s3035_s4 + $0x8] sm:$0xff]   ;;  %vm2891_vm1 = vmmov 0   ;;  %vm870_vm2 = vcmask 261120   ;;  %s3455_s27 = scalar_lea.vmem %s3418_s5, %s3025_s23  ;;  %s2892_s29 = smov 120  }
 0x161   : > { %2617 = vmatprep.subr.bf16.mxu0 %v2890_v32  ;;  %2637 = vmatprep.subr.bf16.mxu1 %v2890_v32  ;;  %v2499_v37 = vld [vmem:[%s3455_s27] ss:$0 sm:$0xff]  ;;  %s2893_s30 = smov 96   ;;  %s2894_s1 = smov 80   ;;  %vm924_vm3 = vcmask 64512   ;;  %vm988_vm4 = vcmask 1043456  }
 0x162   : > { %2618 = vmatpush3.bf16.msra.mxu0 %v2818_v31  ;;  %2621 = vmatprep.mubr.msk.bf16.mxu0 %vm2891_vm1, %v2890_v32  ;;  %v3103_v34 = vld [vmem:[#allocation2] sm:$0xff]  ;;  %s2895_s16 = smov 88   ;;  %s2896_s3 = smov 72   ;;  %vm1375_vm5 = vcmask 130048   ;;  %vm1377_vm6 = vcmask 195584  }
 0x163   : > { %2619 = vmatprep.subr.bf16.mxu0 %v2890_v32  ;;  %2639 = vmatprep.mubr.msk.bf16.mxu1 %vm2891_vm1, %v2890_v32  ;;  %s2897_s21 = smov 112   ;;  %s2898_s17 = smov 104  }
 0x164   : > { %s3456_s4 = sld [smem:[#allocation5_spill]]  ;;  %s3457_s25 = scalar_lea.vmem %s3420_s7, %s3025_s23 }
 0x165   : > { %p2542_p5 = scmp.ne.s32.totalorder %s3019_s22, 1 }
 0x166   : > { %v3105_v35 = vld [vmem:[#allocation2 + $0x8] sm:$0xff]  ;;  %2620 = vmatpush3.bf16.msra.mxu0 %v2819_v33  ;;  %vm2907_vm7 = vmmov (!%p2542_p5), 0   ;;  %vm2208_vm8 = vcmask (!%p2542_p5), 1040384   ;;  %s3461_s27 = sld [smem:[#allocation12_spill]] (!%p2542_p5)  ;;  %vm2345_vm9 = vcmask (!%p2542_p5), 1041408  }
 0x167   : > { %v846_v36 = vpack.c.bf16 %v3105_v35, %v3103_v34  ;;  %2625 = vmatprep.subr.bf16.mxu0 %v2890_v32 }
 0x169   : > { %2622 = vmatmul.mubr.msk.bf16.vlgmr.msra.gmra.mrb[0].mxu0 %vm870_vm2, %v846_v36 }
 0x16a   : > { %2627 = vmatprep.mubr.msk.bf16.mxu0 %vm2891_vm1, %v2890_v32  ;;  %v2503_v4 = vld [vmem:[%s3456_s4] ss:$0 sm:$0xff]  ;;  %v2512_v29 = vld [vmem:[%s3456_s4 + $0x1] ss:$0 sm:$0xff] }
 0x23c   : > { %v908_v38 = vpop.f32.mrb[0].mxu0 }
 0x23d   : > { %v909_v39 = vadd.f32 %v2499_v37, %v908_v38  ;;  %v2623_v40 = vpop.f32.mrb[1].mxu0 }
 0x23e   : > { %v911_v41 = vpop.f32.mrb[2].mxu0 }
 0x23f   : > { %v3121_v42 = vpack.c.bf16 %v909_v39, %v909_v39  ;;  %v2624_v43 = vpop.f32.mrb[3].mxu0  ;;  %v912_v44 = vadd.f32 %v2499_v37, %v911_v41 }
 0x241   : > { %1032 = vrot.lane.b32.xlu1 %v3121_v42, %s2892_s29  ;;  %922 = vrot.lane.b32.xlu0 %v3121_v42, %s2893_s30  ;;  %v3129_v45 = vpack.c.bf16 %v912_v44, %v912_v44 }
 0x245   : > { %1144 = vrot.lane.b32.xlu1 %v3121_v42, %s2894_s1  ;;  %1034 = vrot.lane.b32.xlu0 %v3121_v42, %s2895_s16 }
 0x249   : > { %1254 = vrot.lane.b32.xlu1 %v3121_v42, %s2896_s3  ;;  %1142 = vrot.lane.b32.xlu0 %v3121_v42, %s2897_s21 }
 0x24d   : > { %1252 = vrot.lane.b32.xlu0 %v3121_v42, %s2898_s17  ;;  %1386 = vrot.lane.b32.xlu1 %v3129_v45, %s2893_s30  ;;  %s2900_s30 = smov 64  }
 0x251   : > { %1496 = vrot.lane.b32.xlu0 %v3129_v45, %s2895_s16  ;;  %1494 = vrot.lane.b32.xlu1 %v3129_v45, %s2892_s29  ;;  %s2899_s29 = smov 56   ;;  %s2902_s16 = smov 40  }
 0x255   : > { %1606 = vrot.lane.b32.xlu0 %v3129_v45, %s2894_s1  ;;  %1604 = vrot.lane.b32.xlu1 %v3129_v45, %s2897_s21  ;;  %s2901_s1 = smov 48   ;;  %s2904_s21 = smov 16  }
 0x259   : > { %1716 = vrot.lane.b32.xlu0 %v3129_v45, %s2896_s3  ;;  %1714 = vrot.lane.b32.xlu1 %v3129_v45, %s2898_s17  ;;  %s2903_s3 = smov 8   ;;  %s2905_s17 = smov 24  }
 0x2b3   : > { %v923_v46 = vpop.permute.xlu0 %922  ;;  %v1033_v48 = vpop.permute.xlu1 %1032 }
 0x2b4   : > { %v929_v47 = vsel %vm924_vm3, %v923_v46, 0 }
 0x2b5   : > { %2626 = vmatpush3.bf16.xpose.msra.mxu0 %v929_v47 }
 0x2b6   : > { %2631 = vmatprep.subr.bf16.mxu0 %v2890_v32 }
 0x2b7   : > { %v1035_v49 = vpop.permute.xlu0 %1034  ;;  %v1145_v51 = vpop.permute.xlu1 %1144 }
 0x2b8   : > { %v1040_v50 = vsel %vm924_vm3, %v1035_v49, 0  ;;  %v1150_v52 = vsel %vm924_vm3, %v1145_v51, 0 }
 0x2b9   : > { %2638 = vmatpush3.bf16.xpose.msra.mxu1 %v1040_v50 }
 0x2ba   : > { %2649 = vmatprep.subr.bf16.mxu1 %v2890_v32 }
 0x2bb   : > { %v1255_v53 = vpop.permute.xlu1 %1254  ;;  %v1143_v54 = vpop.permute.xlu0 %1142 }
 0x2bc   : > { %2628 = vmatmul.mubr.msk.bf16.vlgmr.msra.gmra.mrb[4].mxu0 %vm924_vm3, %v3121_v42  ;;  %v1260_v55 = vsel %vm924_vm3, %v1255_v53, 0 }
 0x2bd   : > { %2633 = vmatprep.mubr.msk.bf16.mxu0 %vm2891_vm1, %v2890_v32 }
 0x2bf   : > { %v1387_v56 = vpop.permute.xlu1 %1386  ;;  %v1253_v57 = vpop.permute.xlu0 %1252 }
 0x2c0   : > { %2640 = vmatmul.mubr.msk.bf16.vlgmr.msra.gmra.mrb[0].mxu1 %vm924_vm3, %v1033_v48  ;;  %v1392_v58 = vsel %vm924_vm3, %v1387_v56, 0 }
 0x2c1   : > { %2650 = vmatpush3.bf16.xpose.msra.mxu1 %v1150_v52  ;;  %2651 = vmatprep.mubr.msk.bf16.mxu1 %vm2891_vm1, %v2890_v32 }
 0x2c2   : > { %2661 = vmatprep.subr.bf16.mxu1 %v2890_v32 }
 0x2c3   : > { %v1497_v59 = vpop.permute.xlu0 %1496  ;;  %v1495_v62 = vpop.permute.xlu1 %1494 }
 0x2c4   : > { %v1502_v60 = vsel %vm924_vm3, %v1497_v59, 0 }
 0x2c7   : > { %v1607_v61 = vpop.permute.xlu0 %1606  ;;  %v1605_v1 = vpop.permute.xlu1 %1604 }
 0x2c8   : > { %2652 = vmatmul.mubr.msk.bf16.vlgmr.msra.gmra.mrb[4].mxu1 %vm924_vm3, %v1143_v54  ;;  %v1612_v63 = vsel %vm924_vm3, %v1607_v61, 0 }
 0x2c9   : > { %2662 = vmatpush3.bf16.xpose.msra.mxu1 %v1260_v55  ;;  %2663 = vmatprep.mubr.msk.bf16.mxu1 %vm2891_vm1, %v2890_v32 }
 0x2ca   : > { %2673 = vmatprep.subr.bf16.mxu1 %v2890_v32 }
 0x2cb   : > { %v1717_v0 = vpop.permute.xlu0 %1716  ;;  %v1715_v3 = vpop.permute.xlu1 %1714 }
 0x2cc   : > { %v1722_v2 = vsel %vm924_vm3, %v1717_v0, 0 }
 0x2d0   : > { %2664 = vmatmul.mubr.msk.bf16.vlgmr.msra.gmra.mrb[8].mxu1 %vm924_vm3, %v1253_v57 }
 0x2d1   : > { %2674 = vmatpush3.bf16.xpose.msra.mxu1 %v1392_v58  ;;  %2675 = vmatprep.mubr.msk.bf16.mxu1 %vm2891_vm1, %v2890_v32 }
 0x2d2   : > { %2685 = vmatprep.subr.bf16.mxu1 %v2890_v32 }
 0x2d8   : > { %2676 = vmatmul.mubr.msk.bf16.vlgmr.msra.gmra.mrb[12].mxu1 %vm924_vm3, %v3129_v45 }
 0x2d9   : > { %2686 = vmatpush3.bf16.xpose.msra.mxu1 %v1502_v60  ;;  %2687 = vmatprep.mubr.msk.bf16.mxu1 %vm2891_vm1, %v2890_v32 }
 0x2da   : > { %2697 = vmatprep.subr.bf16.mxu1 %v2890_v32 }
 0x2e0   : > { %2688 = vmatmul.mubr.msk.bf16.vlgmr.msra.gmra.mrb[16].mxu1 %vm924_vm3, %v1495_v62 }
 0x2e1   : > { %2698 = vmatpush3.bf16.xpose.msra.mxu1 %v1612_v63  ;;  %2699 = vmatprep.mubr.msk.bf16.mxu1 %vm2891_vm1, %v2890_v32 }
 0x2e2   : > { %2709 = vmatprep.subr.bf16.mxu1 %v2890_v32 }
 0x2e8   : > { %2700 = vmatmul.mubr.msk.bf16.vlgmr.msra.gmra.mrb[20].mxu1 %vm924_vm3, %v1605_v1 }
 0x2e9   : > { %2710 = vmatpush3.bf16.xpose.msra.mxu1 %v1722_v2  ;;  %2711 = vmatprep.mubr.msk.bf16.mxu1 %vm2891_vm1, %v2890_v32 }
 0x2ea   : > { %2721 = vmatprep.subr.bf16.mxu1 %v2890_v32 }
 0x2f0   : > { %2712 = vmatmul.mubr.msk.bf16.vlgmr.msra.gmra.mrb[24].mxu1 %vm924_vm3, %v1715_v3 }
 0x2f1   : > { %2725 = vmatprep.mubr.msk.bf16.mxu1 %vm2891_vm1, %v2890_v32 }
 0x38f   : > { %v965_v5 = vpop.f32.mrb[4].mxu0 }
 0x390   : > { %v966_v6 = vadd.f32 %v2503_v4, %v965_v5  ;;  %v2629_v7 = vpop.f32.mrb[5].mxu0 }
 0x391   : > { %v968_v8 = vpop.f32.mrb[6].mxu0 }
 0x392   : > { %v2630_v9 = vpop.f32.mrb[7].mxu0  ;;  %v971_v10 = vsel %vm924_vm3, %v966_v6, -inf }
 0x393   : > { %v1076_v11 = vpop.f32.mrb[0].mxu1  ;;  %972 = vmax.xlane.f32.xlu0 %v971_v10 }
 0x394   : > { %v1077_v12 = vadd.f32 %v2503_v4, %v1076_v11  ;;  %v2641_v13 = vpop.f32.mrb[1].mxu1 }
 0x395   : > { %v1079_v14 = vpop.f32.mrb[2].mxu1 }
 0x396   : > { %v2642_v15 = vpop.f32.mrb[3].mxu1  ;;  %v1082_v16 = vsel %vm924_vm3, %v1077_v12, -inf }
 0x397   : > { %1083 = vmax.xlane.f32.xlu1 %v1082_v16 }
 0x39b   : > { %v1186_v17 = vpop.f32.mrb[4].mxu1 }
 0x39c   : > { %v1187_v18 = vadd.f32 %v2503_v4, %v1186_v17  ;;  %v2653_v19 = vpop.f32.mrb[5].mxu1 }
 0x39d   : > { %v1189_v20 = vpop.f32.mrb[6].mxu1 }
 0x39e   : > { %v2654_v21 = vpop.f32.mrb[7].mxu1  ;;  %v1192_v22 = vsel %vm924_vm3, %v1187_v18, -inf }
 0x39f   : > { %1193 = vmax.xlane.f32.xlu0 %v1192_v22 }
 0x3a3   : > { %v1296_v23 = vpop.f32.mrb[8].mxu1 }
 0x3a4   : > { %v3187_v24 = vadd.f32 %v2503_v4, %v1296_v23  ;;  %v2665_v25 = vpop.f32.mrb[9].mxu1 }
 0x3a5   : > { %v1299_v26 = vpop.f32.mrb[10].mxu1 }
 0x3a6   : > { %v2666_v27 = vpop.f32.mrb[11].mxu1  ;;  %v1302_v28 = vsel %vm924_vm3, %v3187_v24, -inf }
 0x3a7   : > { %1303 = vmax.xlane.f32.xlu0 %v1302_v28 }
 0x3ab   : > { %v1428_v30 = vpop.f32.mrb[12].mxu1 }
 0x3ac   : > { %v3194_v31 = vadd.f32 %v2512_v29, %v1428_v30  ;;  %v2677_v33 = vpop.f32.mrb[13].mxu1 }
 0x3ad   : > { %v1431_v36 = vpop.f32.mrb[14].mxu1 }
 0x3ae   : > { %v2678_v37 = vpop.f32.mrb[15].mxu1  ;;  %v1434_v38 = vsel %vm924_vm3, %v3194_v31, -inf }
 0x3af   : > { %1435 = vmax.xlane.f32.xlu1 %v1434_v38 }
 0x3b3   : > { %v1538_v39 = vpop.f32.mrb[16].mxu1 }
 0x3b4   : > { %v3198_v40 = vadd.f32 %v2512_v29, %v1538_v39  ;;  %v2689_v41 = vpop.f32.mrb[17].mxu1 }
 0x3b5   : > { %v1541_v43 = vpop.f32.mrb[18].mxu1 }
 0x3b6   : > { %v2690_v44 = vpop.f32.mrb[19].mxu1  ;;  %v1544_v46 = vsel %vm924_vm3, %v3198_v40, -inf }
 0x3b7   : > { %1545 = vmax.xlane.f32.xlu0 %v1544_v46 }
 0x3bb   : > { %v1648_v47 = vpop.f32.mrb[20].mxu1 }
 0x3bc   : > { %v1649_v48 = vadd.f32 %v2512_v29, %v1648_v47  ;;  %v2701_v49 = vpop.f32.mrb[21].mxu1 }
 0x3bd   : > { %v1651_v50 = vpop.f32.mrb[22].mxu1 }
 0x3be   : > { %v2702_v51 = vpop.f32.mrb[23].mxu1  ;;  %v1654_v52 = vsel %vm924_vm3, %v1649_v48, -inf }
 0x3bf   : > { %1655 = vmax.xlane.f32.xlu1 %v1654_v52 }
 0x3c3   : > { %v1758_v53 = vpop.f32.mrb[24].mxu1 }
 0x3c4   : > { %v2713_v54 = vpop.f32.mrb[25].mxu1  ;;  %v3207_v57 = vadd.f32 %v2512_v29, %v1758_v53 }
 0x3c5   : > { %v1761_v55 = vpop.f32.mrb[26].mxu1 }
 0x3c6   : > { %v2714_v56 = vpop.f32.mrb[27].mxu1  ;;  %v1764_v58 = vsel %vm924_vm3, %v3207_v57, -inf }
 0x3cd   : > { %1094 = vrot.lane.b32.xlu0 %v3121_v42, %s2899_s29 }
 0x3d0   : > { %983 = vrot.lane.b32.xlu1 %v3121_v42, %s2900_s30 }
 0x3ec   : > { %1765 = vmax.xlane.f32.xlu0 %v1764_v58 }
 0x420   : > { %v973_v59 = vpop.xlane.xlu0 %972 }
 0x421   : > { %v974_v60 = vsub.f32 %v966_v6, %v973_v59 }
 0x423   : > { %v975_v61 = vmul.f32 1.442695, %v974_v60 }
 0x424   : > { %v1084_v62 = vpop.xlane.xlu1 %1083 }
 0x425   : > { %2832 = vpow2.f32 %v975_v61  ;;  %v1085_v63 = vsub.f32 %v1077_v12, %v1084_v62 }
 0x427   : > { %v1086_v0 = vmul.f32 1.442695, %v1085_v63 }
 0x429   : > { %2834 = vpow2.f32 %v1086_v0 }
 0x42c   : > { %v1194_v1 = vpop.xlane.xlu0 %1193 }
 0x42d   : > { %v1195_v2 = vsub.f32 %v1187_v18, %v1194_v1 }
 0x42f   : > { %v3211_v3 = vpop.eup %2832  ;;  %v1196_v4 = vmul.f32 1.442695, %v1195_v2 }
 0x430   : > { %v977_v5 = vsel %vm924_vm3, %v3211_v3, 0.0 }
 0x431   : > { %2836 = vpow2.f32 %v1196_v4  ;;  %978 = vadd.xlane.f32.xlu1 %v977_v5 }
 0x433   : > { %v3215_v7 = vpop.eup %2834 }
 0x434   : > { %v1088_v6 = vsel %vm924_vm3, %v3215_v7, 0.0  ;;  %v1304_v13 = vpop.xlane.xlu0 %1303 }
 0x435   : > { %1089 = vadd.xlane.f32.xlu0 %v1088_v6  ;;  %v1305_v15 = vsub.f32 %v3187_v24, %v1304_v13 }
 0x437   : > { %v1306_v16 = vmul.f32 1.442695, %v1305_v15 }
 0x439   : > { %2838 = vpow2.f32 %v1306_v16 }
 0x43b   : > { %v3219_v8 = vpop.eup %2836 }
 0x43c   : > { %v1198_v9 = vsel %vm924_vm3, %v3219_v8, 0.0  ;;  %v1436_v10 = vpop.xlane.xlu1 %1435 }
 0x43d   : > { %1199 = vadd.xlane.f32.xlu1 %v1198_v9  ;;  %v1437_v17 = vsub.f32 %v3194_v31, %v1436_v10 }
 0x43f   : > { %v1438_v20 = vmul.f32 1.442695, %v1437_v17 }
 0x441   : > { %2840 = vpow2.f32 %v1438_v20 }
 0x443   : > { %v2839_v23 = vpop.eup %2838 }
 0x444   : > { %v1546_v18 = vpop.xlane.xlu0 %1545  ;;  %v1308_v25 = vsel %vm924_vm3, %v2839_v23, 0.0 }
 0x445   : > { %v1547_v19 = vsub.f32 %v3198_v40, %v1546_v18 }
 0x448   : > { %v1095_v31 = vpop.permute.xlu0 %1094 }
 0x449   : > { %v1100_v49 = vsel %vm988_vm4, %v1095_v31, 0 }
 0x44b   : > { %1204 = vrot.lane.b32.xlu0 %v3121_v42, %s2901_s1  ;;  %v3233_v26 = vpop.eup %2840 }
 0x44c   : > { %v1656_v11 = vpop.xlane.xlu1 %1655  ;;  %v1440_v27 = vsel %vm924_vm3, %v3233_v26, 0.0 }
 0x44d   : > { %v1657_v21 = vsub.f32 %v1649_v48, %v1656_v11 }
 0x44e   : > { %1314 = vrot.lane.b32.xlu1 %v3121_v42, %s2902_s16  ;;  %v1548_v42 = vmul.f32 1.442695, %v1547_v19 }
 0x44f   : > { %v1658_v22 = vmul.f32 1.442695, %v1657_v21 }
 0x450   : > { %v984_v12 = vpop.permute.xlu1 %983  ;;  %2842 = vpow2.f32 %v1548_v42 }
 0x451   : > { %v990_v14 = vsel %vm988_vm4, %v984_v12, 0  ;;  %2844 = vpow2.f32 %v1658_v22 }
 0x452   : > { %2632 = vmatpush3.bf16.msra.mxu0 %v990_v14 }
 0x453   : > { %2643 = vmatprep.subr.bf16.mxu0 %v2890_v32 }
 0x45a   : > { %v3235_v24 = vpop.eup %2842 }
 0x45b   : > { %v3239_v28 = vpop.eup %2844  ;;  %v1550_v30 = vsel %vm924_vm3, %v3235_v24, 0.0 }
 0x45c   : > { %v1660_v29 = vsel %vm924_vm3, %v3239_v28, 0.0 }
 0x46a   : > { %1309 = vadd.xlane.f32.xlu0 %v1308_v25 }
 0x46e   : > { %1441 = vadd.xlane.f32.xlu0 %v1440_v27 }
 0x472   : > { %1661 = vadd.xlane.f32.xlu0 %v1660_v29  ;;  %1551 = vadd.xlane.f32.xlu1 %v1550_v30 }
 0x479   : > { %v1766_v33 = vpop.xlane.xlu0 %1765 }
 0x47a   : > { %v1767_v36 = vsub.f32 %v3207_v57, %v1766_v33 }
 0x47c   : > { %v1768_v37 = vmul.f32 1.442695, %v1767_v36 }
 0x47e   : > { %2846 = vpow2.f32 %v1768_v37 }
 0x483   : > { %1556 = vrot.lane.b32.xlu1 %v3129_v45, %s2899_s29  ;;  %s3458_s29 = scalar_lea.vmem %s3421_s8, %s3025_s23 }
 0x487   : > { %1666 = vrot.lane.b32.xlu1 %v3129_v45, %s2901_s1  ;;  %s3459_s1 = scalar_lea.vmem %s3422_s9, %s3025_s23 }
 0x488   : > { %v3250_v38 = vpop.eup %2846 }
 0x489   : > { %v1770_v39 = vsel %vm924_vm3, %v3250_v38, 0.0 }
 0x48a   : > { %1771 = vadd.xlane.f32.xlu0 %v1770_v39 }
 0x48b   : > { %1776 = vrot.lane.b32.xlu1 %v3129_v45, %s2902_s16  ;;  %s3462_s16 = sld [smem:[#allocation11_spill]] (!%p2542_p5) }
 0x4a0   : > { %1446 = vrot.lane.b32.xlu0 %v3129_v45, %s2900_s30 }
 0x4be   : > { %v979_v40 = vpop.xlane.xlu1 %978 }
 0x4bf   : > { %2848 = vrcp.f32 %v979_v40 }
 0x4c2   : > { %v1090_v41 = vpop.xlane.xlu0 %1089 }
 0x4c3   : > { %2850 = vrcp.f32 %v1090_v41 }
 0x4c6   : > { %v1205_v50 = vpop.permute.xlu0 %1204 }
 0x4c7   : > { %v1210_v53 = vsel %vm988_vm4, %v1205_v50, 0 }
 0x4c9   : > { %v2849_v43 = vpop.eup %2848 }
 0x4ca   : > { %v981_v44 = vmul.f32 %v2849_v43, %v3211_v3  ;;  %v1200_v46 = vpop.xlane.xlu1 %1199 }
 0x4cb   : > { %2852 = vrcp.f32 %v1200_v46 }
 0x4cc   : > { %v982_v47 = vpack.c.bf16 %v981_v44, %v981_v44 }
 0x4cd   : > { %v2851_v48 = vpop.eup %2850 }
 0x4ce   : > { %2634 = vmatmul.mubr.msk.bf16.vlgmr.msra.gmra.mrb[8].mxu0 %vm924_vm3, %v982_v47  ;;  %v1092_v45 = vmul.f32 %v2851_v48, %v3215_v7  ;;  %v1315_v55 = vpop.permute.xlu1 %1314  ;;  %v2820_v47 = vld [vmem:[%s3040_s0] sm:$0xff]  }
 0x4cf   : > { %2644 = vmatpush3.bf16.msra.mxu0 %v1100_v49  ;;  %2645 = vmatprep.mubr.msk.bf16.mxu0 %vm2891_vm1, %v2890_v32  ;;  %v1320_v57 = vsel %vm988_vm4, %v1315_v55, 0 }
 0x4d0   : > { %2655 = vmatprep.subr.bf16.mxu0 %v2890_v32  ;;  %v1093_v51 = vpack.c.bf16 %v1092_v45, %v1092_v45  ;;  %2722 = vmatpush3.bf16.msra.mxu1 %v2820_v47 }
 0x4d1   : > { %2723 = vmatprep.subr.bf16.mxu1 %v2890_v32 }
 0x4d5   : > { %v2853_v52 = vpop.eup %2852 }
 0x4d6   : > { %2646 = vmatmul.mubr.msk.bf16.vlgmr.msra.gmra.mrb[12].mxu0 %vm924_vm3, %v1093_v51  ;;  %v1202_v54 = vmul.f32 %v2853_v52, %v3219_v8  ;;  %v2821_v51 = vld [vmem:[%s3040_s0 + $0x8] sm:$0xff]  }
 0x4d7   : > { %2656 = vmatpush3.bf16.msra.mxu0 %v1210_v53  ;;  %2657 = vmatprep.mubr.msk.bf16.mxu0 %vm2891_vm1, %v2890_v32 }
 0x4d8   : > { %2667 = vmatprep.subr.bf16.mxu0 %v2890_v32  ;;  %v1203_v56 = vpack.c.bf16 %v1202_v54, %v1202_v54  ;;  %2724 = vmatpush3.bf16.msra.mxu1 %v2821_v51 }
 0x4d9   : > { %2737 = vmatprep.subr.bf16.mxu1 %v2890_v32 }
 0x4de   : > { %2658 = vmatmul.mubr.msk.bf16.vlgmr.msra.gmra.mrb[16].mxu0 %vm924_vm3, %v1203_v56 }
 0x4df   : > { %2668 = vmatpush3.bf16.msra.mxu0 %v1320_v57  ;;  %2669 = vmatprep.mubr.msk.bf16.mxu0 %vm2891_vm1, %v2890_v32 }
 0x4e0   : > { %2679 = vmatprep.subr.bf16.mxu0 %v2890_v32 }
 0x4f7   : > { %v1310_v58 = vpop.xlane.xlu0 %1309 }
 0x4f8   : > { %2854 = vrcp.f32 %v1310_v58 }
 0x4fb   : > { %v1442_v62 = vpop.xlane.xlu0 %1441 }
 0x4fc   : > { %2856 = vrcp.f32 %v1442_v62 }
 0x4ff   : > { %v1552_v63 = vpop.xlane.xlu1 %1551  ;;  %v1662_v0 = vpop.xlane.xlu0 %1661 }
 0x500   : > { %2858 = vrcp.f32 %v1552_v63 }
 0x501   : > { %2860 = vrcp.f32 %v1662_v0 }
 0x502   : > { %v2855_v59 = vpop.eup %2854 }
 0x503   : > { %v1312_v60 = vmul.f32 %v2855_v59, %v2839_v23  ;;  %v1557_v7 = vpop.permute.xlu1 %1556 }
 0x504   : > { %v1562_v9 = vsel %vm988_vm4, %v1557_v7, 0 }
 0x505   : > { %v1313_v61 = vpack.c.bf16 %v1312_v60, %v1312_v60 }
 0x506   : > { %v2857_v1 = vpop.eup %2856 }
 0x507   : > { %2670 = vmatmul.mubr.msk.bf16.vlgmr.msra.gmra.mrb[20].mxu0 %vm924_vm3, %v1313_v61  ;;  %v1444_v3 = vmul.f32 %v2857_v1, %v3233_v26  ;;  %v1667_v11 = vpop.permute.xlu1 %1666 }
 0x508   : > { %2681 = vmatprep.mubr.msk.bf16.mxu0 %vm2891_vm1, %v2890_v32  ;;  %v1672_v14 = vsel %vm988_vm4, %v1667_v11, 0 }
 0x509   : > { %v1445_v6 = vpack.c.bf16 %v1444_v3, %v1444_v3 }
 0x50a   : > { %v2859_v8 = vpop.eup %2858 }
 0x50b   : > { %v1554_v10 = vmul.f32 %v2859_v8, %v3235_v24  ;;  %v2861_v13 = vpop.eup %2860  ;;  %v1777_v16 = vpop.permute.xlu1 %1776 }
 0x50c   : > { %v1664_v15 = vmul.f32 %v2861_v13, %v3239_v28  ;;  %v1782_v19 = vsel %vm988_vm4, %v1777_v16, 0 }
 0x50d   : > { %v1555_v12 = vpack.c.bf16 %v1554_v10, %v1554_v10 }
 0x50e   : > { %v1665_v17 = vpack.c.bf16 %v1664_v15, %v1664_v15 }
 0x517   : > { %v1772_v2 = vpop.xlane.xlu0 %1771 }
 0x518   : > { %2862 = vrcp.f32 %v1772_v2 }
 0x51b   : > { %v1447_v4 = vpop.permute.xlu0 %1446 }
 0x51c   : > { %v1452_v5 = vsel %vm988_vm4, %v1447_v4, 0 }
 0x51d   : > { %2680 = vmatpush3.bf16.msra.mxu0 %v1452_v5 }
 0x51e   : > { %2691 = vmatprep.subr.bf16.mxu0 %v2890_v32 }
 0x520   : > { %2682 = vmatmul.mubr.msk.bf16.vlgmr.msra.gmra.mrb[24].mxu0 %vm924_vm3, %v1445_v6 }
 0x521   : > { %2692 = vmatpush3.bf16.msra.mxu0 %v1562_v9  ;;  %2693 = vmatprep.mubr.msk.bf16.mxu0 %vm2891_vm1, %v2890_v32 }
 0x522   : > { %2703 = vmatprep.subr.bf16.mxu0 %v2890_v32  ;;  %v2863_v18 = vpop.eup %2862 }
 0x523   : > { %v1774_v20 = vmul.f32 %v2863_v18, %v3250_v38 }
 0x525   : > { %v1775_v21 = vpack.c.bf16 %v1774_v20, %v1774_v20 }
 0x528   : > { %2694 = vmatmul.mubr.msk.bf16.vlgmr.msra.gmra.mrb[28].mxu0 %vm924_vm3, %v1555_v12 }
 0x529   : > { %2704 = vmatpush3.bf16.msra.mxu0 %v1672_v14  ;;  %2705 = vmatprep.mubr.msk.bf16.mxu0 %vm2891_vm1, %v2890_v32  ;;  %v2521_v14 = vld [vmem:[%s3457_s25] ss:$0 sm:$0xff]  ;;  %s3460_s25 = sld [smem:[#allocation10_spill]] (!%p2542_p5) }
 0x52a   : > { %2715 = vmatprep.subr.bf16.mxu0 %v2890_v32 }
 0x530   : > { %2706 = vmatmul.mubr.msk.bf16.vlgmr.msra.gmra.mrb[32].mxu0 %vm924_vm3, %v1665_v17 }
 0x531   : > { %2716 = vmatpush3.bf16.msra.mxu0 %v1782_v19  ;;  %2717 = vmatprep.mubr.msk.bf16.mxu0 %vm2891_vm1, %v2890_v32 }
 0x532   : > { %2729 = vmatprep.subr.bf16.mxu0 %v2890_v32 }
 0x538   : > { %2718 = vmatmul.mubr.msk.bf16.vlgmr.msra.gmra.mrb[36].mxu0 %vm924_vm3, %v1775_v21 }
 0x539   : > { %2733 = vmatprep.mubr.msk.bf16.mxu0 %vm2891_vm1, %v2890_v32 }
 0x5a1   : > { %v1026_v42 = vpop.f32.mrb[8].mxu0 }
 0x5a2   : > { %v2635_v22 = vpop.f32.mrb[9].mxu0 }
 0x5a3   : > { %v1029_v23 = vpop.f32.mrb[10].mxu0 }
 0x5a4   : > { %v2636_v25 = vpop.f32.mrb[11].mxu0 }
 0x5a9   : > { %v1136_v26 = vpop.f32.mrb[12].mxu0 }
 0x5aa   : > { %v2647_v24 = vpop.f32.mrb[13].mxu0 }
 0x5ab   : > { %v1139_v27 = vpop.f32.mrb[14].mxu0 }
 0x5ac   : > { %v2648_v28 = vpop.f32.mrb[15].mxu0 }
 0x5b1   : > { %v1246_v29 = vpop.f32.mrb[16].mxu0 }
 0x5b2   : > { %v2659_v30 = vpop.f32.mrb[17].mxu0 }
 0x5b3   : > { %v1249_v31 = vpop.f32.mrb[18].mxu0 }
 0x5b4   : > { %v2660_v33 = vpop.f32.mrb[19].mxu0 }
 0x5da   : > { %v1356_v36 = vpop.f32.mrb[20].mxu0 }
 0x5db   : > { %v2671_v37 = vpop.f32.mrb[21].mxu0 }
 0x5dc   : > { %v1359_v38 = vpop.f32.mrb[22].mxu0 }
 0x5dd   : > { %v2672_v39 = vpop.f32.mrb[23].mxu0 }
 0x5f3   : > { %v1488_v40 = vpop.f32.mrb[24].mxu0 }
 0x5f4   : > { %v2683_v41 = vpop.f32.mrb[25].mxu0 }
 0x5f5   : > { %v1491_v43 = vpop.f32.mrb[26].mxu0 }
 0x5f6   : > { %v2684_v44 = vpop.f32.mrb[27].mxu0 }
 0x5fb   : > { %v1598_v46 = vpop.f32.mrb[28].mxu0 }
 0x5fc   : > { %v2803_v48 = vpack.i.bf16 %v1598_v46, %v1136_v26  ;;  %v2695_v49 = vpop.f32.mrb[29].mxu0  ;;  %v2525_v46 = vld [vmem:[%s3458_s29] ss:$0 sm:$0xff] }
 0x5fd   : > { %v1601_v45 = vpop.f32.mrb[30].mxu0 }
 0x5fe   : > { %2804 = vrot.lane.b32.xlu1 %v2803_v48, %s2903_s3  ;;  %v2696_v50 = vpop.f32.mrb[31].mxu0 }
 0x5ff   : > { %v2526_v50 = vld [vmem:[%s3459_s1] ss:$0 sm:$0xff] }
 0x603   : > { %v1708_v52 = vpop.f32.mrb[32].mxu0 }
 0x604   : > { %v2808_v53 = vpack.i.bf16 %v1708_v52, %v1246_v29  ;;  %v2707_v54 = vpop.f32.mrb[33].mxu0 }
 0x605   : > { %v1711_v55 = vpop.f32.mrb[34].mxu0 }
 0x606   : > { %2809 = vrot.lane.b32.xlu1 %v2808_v53, %s2904_s21  ;;  %v2708_v56 = vpop.f32.mrb[35].mxu0  ;;  %v2824_v55 = vld [vmem:[%s3067_s20] sm:$0xff]  }
 0x607   : > { %v2825_v56 = vld [vmem:[%s3067_s20 + $0x8] sm:$0xff]  }
 0x60b   : > { %v1818_v57 = vpop.f32.mrb[36].mxu0 }
 0x60c   : > { %v2813_v58 = vpack.i.bf16 %v1818_v57, %v1356_v36  ;;  %v2719_v59 = vpop.f32.mrb[37].mxu0  ;;  %v2823_v36 = vld [vmem:[%s3057_s28 + $0x8] sm:$0xff]   ;;  %v2826_v57 = vld [vmem:[%s3067_s20 + $0x10] sm:$0xff]  }
 0x60d   : > { %v1821_v60 = vpop.f32.mrb[38].mxu0  ;;  %v2828_v59 = vld [vmem:[%s3067_s20 + $0x20] sm:$0xff]  }
 0x60e   : > { %2814 = vrot.lane.b32.xlu0 %v2813_v58, %s2905_s17  ;;  %v2720_v61 = vpop.f32.mrb[39].mxu0  ;;  %v2827_v58 = vld [vmem:[%s3067_s20 + $0x18] sm:$0xff]   ;;  %v2829_v60 = vld [vmem:[%s3067_s20 + $0x28] sm:$0xff]   ;;  %s3464_s17 = sld [smem:[#allocation14_spill]] (!%p2542_p5) }
 0x60f   : > { %v2830_v61 = vld [vmem:[%s3067_s20 + $0x30] sm:$0xff]  }
 0x670   : > { %v2805_v62 = vpop.permute.xlu1 %2804 }
 0x671   : > { %v2807_v0 = vunpack.i.h.bf16 %v2805_v62  ;;  %v2806_v1 = vunpack.i.l.bf16 %v2805_v62  ;;  %v2831_v62 = vld [vmem:[%s3067_s20 + $0x38] sm:$0xff]   ;;  %s3463_s20 = sld [smem:[#allocation13_spill]] (!%p2542_p5) }
 0x673   : > { %v1836_v5 = vsel %vm924_vm3, %v1488_v40, %v2807_v0  ;;  %v1374_v7 = vsel %vm924_vm3, %v1026_v42, %v2806_v1 }
 0x678   : > { %v2810_v63 = vpop.permute.xlu1 %2809 }
 0x679   : > { %v2812_v2 = vunpack.i.h.bf16 %v2810_v63  ;;  %v2811_v3 = vunpack.i.l.bf16 %v2810_v63  ;;  %v2527_v63 = vld [vmem:[%s772_s6] ss:$0 sm:$0xff] }
 0x67b   : > { %v1837_v9 = vsel %vm1375_vm5, %v1836_v5, %v2812_v2  ;;  %v1376_v10 = vsel %vm1375_vm5, %v1374_v7, %v2811_v3 }
 0x680   : > { %v2815_v4 = vpop.permute.xlu0 %2814 }
 0x681   : > { %v2817_v6 = vunpack.i.h.bf16 %v2815_v4  ;;  %v2816_v8 = vunpack.i.l.bf16 %v2815_v4 }
 0x683   : > { %v1838_v11 = vsel %vm1377_vm6, %v1837_v9, %v2817_v6  ;;  %v1378_v12 = vsel %vm1377_vm6, %v1376_v10, %v2816_v8 }
 0x684   : > { %v1839_v13 = vpack.c.bf16 %v1838_v11, %v1378_v12 }
 0x686   : > { %2726 = vmatmul.mubr.msk.bf16.vlgmr.msra.gmra.mrb[28].mxu1 %vm870_vm2, %v1839_v13 }
 0x687   : > { %2753 = vmatprep.mubr.msk.bf16.mxu1 %vm2891_vm1, %v2890_v32  ;;  %2738 = vmatpush3.bf16.msra.mxu1 %v2824_v55 }
 0x688   : > { %2739 = vmatprep.subr.bf16.mxu1 %v2890_v32 }
 0x68b   : > { %2740 = vmatpush3.bf16.msra.mxu1 %v2825_v56  ;;  %v2541_v56 = vld [vmem:[%s786_s18] ss:$0 sm:$0xff] }
 0x68c   : > { %2741 = vmatprep.subr.bf16.mxu1 %v2890_v32 }
 0x68f   : > { %2742 = vmatpush3.bf16.msra.mxu1 %v2826_v57 }
 0x690   : > { %2743 = vmatprep.subr.bf16.mxu1 %v2890_v32 }
 0x693   : > { %2744 = vmatpush3.bf16.msra.mxu1 %v2827_v58 }
 0x694   : > { %2745 = vmatprep.subr.bf16.mxu1 %v2890_v32 }
 0x697   : > { %2746 = vmatpush3.bf16.msra.mxu1 %v2828_v59 }
 0x698   : > { %2747 = vmatprep.subr.bf16.mxu1 %v2890_v32 }
 0x69b   : > { %2748 = vmatpush3.bf16.msra.mxu1 %v2829_v60 }
 0x69c   : > { %2749 = vmatprep.subr.bf16.mxu1 %v2890_v32 }
 0x69f   : > { %2750 = vmatpush3.bf16.msra.mxu1 %v2830_v61 }
 0x6a0   : > { %2751 = vmatprep.subr.bf16.mxu1 %v2890_v32 }
 0x6a3   : > { %2752 = vmatpush3.bf16.msra.mxu1 %v2831_v62  ;;  %v2876_v62 = vld [vmem:[%s3460_s25] sm:$0xff] (!%p2542_p5)  }
 0x759   : > { %v1900_v15 = vpop.f32.mrb[28].mxu1 }
 0x75a   : > { %v1901_v16 = vadd.f32 %v2521_v14, %v1900_v15  ;;  %v2727_v17 = vpop.f32.mrb[29].mxu1 }
 0x75b   : > { %v1903_v18 = vpop.f32.mrb[30].mxu1 }
 0x75c   : > { %v1904_v19 = vadd.f32 %v2521_v14, %v1903_v18  ;;  %v2728_v20 = vpop.f32.mrb[31].mxu1  ;;  %v1907_v21 = vadd.f32 %v1901_v16, %v3103_v34 }
 0x75e   : > { %v1911_v42 = vsel %vm870_vm2, %v1907_v21, 0.0  ;;  %v1908_v22 = vadd.f32 %v1904_v19, %v3105_v35  ;;  %v2822_v35 = vld [vmem:[%s3057_s28] sm:$0xff]  }
 0x75f   : > { %1912 = vadd.xlane.f32.xlu1 %v1911_v42  ;;  %2730 = vmatpush3.bf16.msra.mxu0 %v2822_v35 }
 0x760   : > { %v1914_v23 = vsel %vm870_vm2, %v1908_v22, 0.0  ;;  %2731 = vmatprep.subr.bf16.mxu0 %v2890_v32 }
 0x761   : > { %1915 = vadd.xlane.f32.xlu0 %v1914_v23  ;;  %v2531_v23 = vld [vmem:[%s780_s2] ss:$0 sm:$0xff] }
 0x763   : > { %2732 = vmatpush3.bf16.msra.mxu0 %v2823_v36 }
 0x7ec   : > { %v1913_v25 = vpop.xlane.xlu1 %1912 }
 0x7ed   : > { %v1918_v26 = vmul.f32 0.03125, %v1913_v25 }
 0x7ee   : > { %v1916_v24 = vpop.xlane.xlu0 %1915 }
 0x7ef   : > { %v1920_v27 = vsub.f32 %v1907_v21, %v1918_v26  ;;  %v1919_v28 = vmul.f32 0.03125, %v1916_v24 }
 0x7f1   : > { %v1921_v29 = vsub.f32 %v1908_v22, %v1919_v28  ;;  %v1922_v30 = vmul.f32 %v1920_v27, %v1920_v27 }
 0x7f3   : > { %v1924_v31 = vsel %vm870_vm2, %v1922_v30, 0.0  ;;  %v1923_v34 = vmul.f32 %v1921_v29, %v1921_v29 }
 0x7f4   : > { %1925 = vadd.xlane.f32.xlu0 %v1924_v31 }
 0x7f5   : > { %v1927_v33 = vsel %vm870_vm2, %v1923_v34, 0.0 }
 0x7f6   : > { %1928 = vadd.xlane.f32.xlu1 %v1927_v33 }
 0x881   : > { %v1926_v37 = vpop.xlane.xlu0 %1925 }
 0x882   : > { %v1930_v38 = vmul.f32 0.03125, %v1926_v37 }
 0x883   : > { %v1929_v39 = vpop.xlane.xlu1 %1928 }
 0x884   : > { %v1932_v40 = vadd.f32 1e-12, %v1930_v38  ;;  %v1931_v41 = vmul.f32 0.03125, %v1929_v39 }
 0x886   : > { %2864 = vrsqrt.f32 %v1932_v40  ;;  %v1933_v43 = vadd.f32 1e-12, %v1931_v41 }
 0x888   : > { %2866 = vrsqrt.f32 %v1933_v43 }
 0x890   : > { %v2865_v44 = vpop.eup %2864 }
 0x891   : > { %v1936_v47 = vmul.f32 %v2865_v44, %v1920_v27 }
 0x892   : > { %v2867_v48 = vpop.eup %2866 }
 0x893   : > { %v1944_v49 = vmul.f32 %v2525_v46, %v1936_v47  ;;  %v1937_v45 = vmul.f32 %v2867_v48, %v1921_v29 }
 0x895   : > { %v1945_v51 = vmul.f32 %v2525_v46, %v1937_v45  ;;  %v3336_v52 = vadd.f32 %v2526_v50, %v1944_v49 }
 0x897   : > { %v3338_v53 = vadd.f32 %v2526_v50, %v1945_v51 }
 0x899   : > { %v1954_v54 = vpack.c.bf16 %v3338_v53, %v3336_v52 }
 0x89b   : > { %2734 = vmatmul.mubr.msk.bf16.vlgmr.msra.gmra.mrb[40].mxu0 %vm870_vm2, %v1954_v54 }
 0x96e   : > { %v2015_v0 = vpop.f32.mrb[40].mxu0 }
 0x96f   : > { %v2016_v1 = vadd.f32 %v2527_v63, %v2015_v0  ;;  %v2735_v2 = vpop.f32.mrb[41].mxu0  ;;  %v2877_v0 = vld [vmem:[%s3460_s25 + $0x8] sm:$0xff] (!%p2542_p5)  }
 0x970   : > { %v2018_v3 = vpop.f32.mrb[42].mxu0 }
 0x971   : > { %v2024_v4 = vmul.f32 0.044715, %v2016_v1  ;;  %v2019_v5 = vadd.f32 %v2527_v63, %v2018_v3  ;;  %v2736_v7 = vpop.f32.mrb[43].mxu0  ;;  %v2022_v18 = vmul.f32 0.5, %v2016_v1  ;;  %v2906_v63 = vmov (!%p2542_p5), 0.0  }
 0x972   : > { %2757 = vmatprep.subr.bf16.mxu0 (!%p2542_p5), %v2906_v63  ;;  %2765 = vmatprep.subr.bf16.mxu1 (!%p2542_p5), %v2906_v63  ;;  %v2543_v7 = vld [vmem:[%s3462_s16] ss:$0 sm:$0xff] (!%p2542_p5) }
 0x973   : > { %v2026_v6 = vmul.f32 %v2024_v4, %v2016_v1  ;;  %v2025_v8 = vmul.f32 0.044715, %v2019_v5  ;;  %v2023_v19 = vmul.f32 0.5, %v2019_v5  ;;  %2758 = vmatpush3.bf16.msra.mxu0 (!%p2542_p5), %v2876_v62  ;;  %2761 = vmatprep.mubr.msk.bf16.mxu0 (!%p2542_p5), %vm2907_vm7, %v2906_v63  ;;  %v2878_v4 = vld [vmem:[%s3461_s27] sm:$0xff] (!%p2542_p5)  }
 0x974   : > { %2759 = vmatprep.subr.bf16.mxu0 (!%p2542_p5), %v2906_v63 }
 0x975   : > { %v2028_v9 = vmul.f32 %v2026_v6, %v2016_v1  ;;  %v2027_v10 = vmul.f32 %v2025_v8, %v2019_v5 }
 0x977   : > { %v2030_v11 = vadd.f32 %v2028_v9, %v2016_v1  ;;  %v2029_v12 = vmul.f32 %v2027_v10, %v2019_v5  ;;  %2760 = vmatpush3.bf16.msra.mxu0 (!%p2542_p5), %v2877_v0 }
 0x979   : > { %v2032_v32 = vmul.f32 0.7978846, %v2030_v11  ;;  %v2031_v13 = vadd.f32 %v2029_v12, %v2019_v5  ;;  %v2879_v5 = vld [vmem:[%s3461_s27 + $0x8] sm:$0xff] (!%p2542_p5)  }
 0x97b   : > { %2868 = vtanh.f32 %v2032_v32  ;;  %v2033_v14 = vmul.f32 0.7978846, %v2031_v13  ;;  %v2547_v13 = vld [vmem:[%s3463_s20] ss:$0 sm:$0xff] (!%p2542_p5) }
 0x97d   : > { %2870 = vtanh.f32 %v2033_v14 }
 0x985   : > { %v2869_v15 = vpop.eup %2868 }
 0x986   : > { %v2036_v16 = vadd.f32 1.0, %v2869_v15 }
 0x987   : > { %v2871_v17 = vpop.eup %2870 }
 0x988   : > { %v2037_v20 = vadd.f32 1.0, %v2871_v17  ;;  %v2038_v21 = vmul.f32 %v2036_v16, %v2022_v18 }
 0x98a   : > { %v2039_v42 = vmul.f32 %v2037_v20, %v2023_v19 }
 0x98c   : > { %v2040_v22 = vpack.c.bf16 %v2039_v42, %v2038_v21 }
 0x98e   : > { %2754 = vmatmul.mubr.bf16.vlgmr.msra.gmra.mrb[32].mxu1 %v2040_v22 }
 0x98f   : > { %2769 = vmatprep.mubr.msk.bf16.mxu1 (!%p2542_p5), %vm2907_vm7, %v2906_v63  ;;  %2766 = vmatpush3.bf16.msra.mxu1 (!%p2542_p5), %v2878_v4 }
 0x990   : > { %2767 = vmatprep.subr.bf16.mxu1 (!%p2542_p5), %v2906_v63 }
 0x993   : > { %2768 = vmatpush3.bf16.msra.mxu1 (!%p2542_p5), %v2879_v5 }
 0xa61   : > { %v2146_v25 = vpop.f32.mrb[32].mxu1 }
 0xa62   : > { %v2147_v26 = vadd.f32 %v2531_v23, %v2146_v25  ;;  %v2755_v24 = vpop.f32.mrb[33].mxu1 }
 0xa63   : > { %v2149_v27 = vpop.f32.mrb[34].mxu1 }
 0xa64   : > { %v2150_v28 = vadd.f32 %v2531_v23, %v2149_v27  ;;  %v2756_v29 = vpop.f32.mrb[35].mxu1  ;;  %v2153_v30 = vadd.f32 %v2147_v26, %v3336_v52 }
 0xa66   : > { %v2157_v31 = vsel %vm870_vm2, %v2153_v30, 0.0  ;;  %v2154_v34 = vadd.f32 %v2150_v28, %v3338_v53  ;;  %v2540_v53 = vld [vmem:[%s783_s26] ss:$0 sm:$0xff] }
 0xa67   : > { %2158 = vadd.xlane.f32.xlu0 %v2157_v31 }
 0xa68   : > { %v2160_v33 = vsel %vm870_vm2, %v2154_v34, 0.0 }
 0xa69   : > { %2161 = vadd.xlane.f32.xlu1 %v2160_v33 }
 0xaf4   : > { %v2159_v35 = vpop.xlane.xlu0 %2158 }
 0xaf5   : > { %v2163_v36 = vmul.f32 0.03125, %v2159_v35 }
 0xaf6   : > { %v2162_v37 = vpop.xlane.xlu1 %2161 }
 0xaf7   : > { %v2165_v38 = vsub.f32 %v2153_v30, %v2163_v36  ;;  %v2164_v39 = vmul.f32 0.03125, %v2162_v37 }
 0xaf9   : > { %v2166_v40 = vsub.f32 %v2154_v34, %v2164_v39  ;;  %v2167_v41 = vmul.f32 %v2165_v38, %v2165_v38 }
 0xafb   : > { %v2169_v43 = vsel %vm870_vm2, %v2167_v41, 0.0  ;;  %v2168_v44 = vmul.f32 %v2166_v40, %v2166_v40 }
 0xafc   : > { %2170 = vadd.xlane.f32.xlu0 %v2169_v43 }
 0xafd   : > { %v2172_v46 = vsel %vm870_vm2, %v2168_v44, 0.0 }
 0xafe   : > { %2173 = vadd.xlane.f32.xlu1 %v2172_v46 }
 0xb89   : > { %v2171_v47 = vpop.xlane.xlu0 %2170 }
 0xb8a   : > { %v2175_v48 = vmul.f32 0.03125, %v2171_v47 }
 0xb8b   : > { %v2174_v49 = vpop.xlane.xlu1 %2173 }
 0xb8c   : > { %v2177_v45 = vadd.f32 1e-12, %v2175_v48  ;;  %v2176_v50 = vmul.f32 0.03125, %v2174_v49 }
 0xb8e   : > { %2872 = vrsqrt.f32 %v2177_v45  ;;  %v2178_v51 = vadd.f32 1e-12, %v2176_v50 }
 0xb90   : > { %2874 = vrsqrt.f32 %v2178_v51 }
 0xb98   : > { %v2873_v52 = vpop.eup %2872 }
 0xb99   : > { %v2181_v54 = vmul.f32 %v2873_v52, %v2165_v38 }
 0xb9a   : > { %v2875_v55 = vpop.eup %2874 }
 0xb9b   : > { %v2189_v57 = vmul.f32 %v2540_v53, %v2181_v54  ;;  %v2182_v58 = vmul.f32 %v2875_v55, %v2166_v40  ;;  %2204 = sbr.rel (%p2542_p5) target bundleno = 3425 (0xd61), region = 108 }
 0xb9d   : > { %v2197_v59 = vadd.f32 %v2541_v56, %v2189_v57  ;;  %v2190_v60 = vmul.f32 %v2540_v53, %v2182_v58 }
 0xb9f   : > { %2199 = vst.msk [vmem:[#allocation2] sm:$0xff] %vm870_vm2, %v2197_v59  ;;  %v2198_v61 = vadd.f32 %v2541_v56, %v2190_v60 }
 0xba1   : > { %2200 = vst.msk [vmem:[#allocation2 + $0x8] sm:$0xff] %vm870_vm2, %v2198_v61  ;;  %v2206_v1 = vrot.slane (!%p2542_p5), %v2198_v61, 7 }
 0xba3   : > { %v2209_v2 = vsel %vm2208_vm8, %v2197_v59, %v2206_v1 }
 0xba4   : > { %v2210_v3 = vpack.c.bf16 %v2209_v2, %v2209_v2 }
 0xba6   : > { %2762 = vmatmul.mubr.msk.bf16.vlgmr.msra.gmra.mrb[0].mxu0 %vm870_vm2, %v2210_v3 }
 0xc79   : > { %v2271_v6 = vpop.f32.mrb[0].mxu0 }
 0xc7a   : > { %v2272_v8 = vadd.f32 %v2543_v7, %v2271_v6  ;;  %v2763_v9 = vpop.f32.mrb[1].mxu0 }
 0xc7b   : > { %v2274_v10 = vpop.f32.mrb[2].mxu0 }
 0xc7c   : > { %2880 = vtanh.f32 %v2272_v8  ;;  %v2764_v11 = vpop.f32.mrb[3].mxu0 }
 0xc86   : > { %v2881_v12 = vpop.eup %2880 }
 0xc87   : > { %v2278_v32 = vpack.c.bf16 %v2881_v12, %v2881_v12 }
 0xc89   : > { %2770 = vmatmul.mubr.msk.bf16.vlgmr.msra.gmra.mrb[0].mxu1 %vm870_vm2, %v2278_v32 }
 0xd5c   : > { %v2339_v14 = vpop.f32.mrb[0].mxu1 }
 0xd5d   : > { %v2340_v15 = vadd.f32 %v2547_v13, %v2339_v14  ;;  %v2771_v16 = vpop.f32.mrb[1].mxu1 }
 0xd5e   : > { %v2342_v17 = vpop.f32.mrb[2].mxu1 }
 0xd5f   : > { %v2346_v18 = vsel %vm2345_vm9, %v2340_v15, 0.0  ;;  %v2772_v19 = vpop.f32.mrb[3].mxu1 }
 0xd60   : > { %2347 = vst [vmem:[%s3464_s17] sm:$0xff] %v2346_v18 }
 0xd61 PF: > { %s3465_s0 = sld [smem:[#allocation3_spill]] }
 0xd67   : > { %s30_s1 = sadd.s32 1, %s3465_s0  }
 0xd68   : > { %p27_p6 = scmp.ge.s32.totalorder %s30_s1, 4  }
 0xd6a   :  { %29 = sbr.rel (!%p27_p6) target bundleno = 12 (0xc), region = 167 }

</bundles_post_ra>
